<compile_context>
chip_gen: v5e
topology: v5e:2x2
jax: 0.10.0
libtpu: 0.0.40
codegen_flags: <defaults>
</compile_context>

<pallas_src>
import functools

import jax
import jax.numpy as jnp
from jax import lax
from jax.experimental import pallas as pl
from jax.experimental.pallas import tpu as pltpu


def _leaky(v):
    return jnp.where(v > 0, v, 0.1 * v)


def _fused_basic_block_kernel(x_strip_ref, x_top_ref, x_bot_ref,
                              w1_ref, s1_ref, b1_ref,
                              w2_ref, s2_ref, b2_ref,
                              o_ref, *, shortcut):
    # Per grid step (n, s):
    #   x_strip_ref : (1, TH, W, Cin)  rows [s*TH, s*TH+TH) of image n   (f32)
    #   x_top_ref   : (1, 1,  W, Cin)  row  s*TH-1   (clamped at image top)
    #   x_bot_ref   : (1, 1,  W, Cin)  row  s*TH+TH  (clamped at image bottom)
    #   w1_ref      : (Cin, Cmid)            bf16
    #   s1/b1_ref   : (1, Cmid)              f32 folded BN1 scale/shift
    #   w2_ref      : (3, 3, Cmid, Cout)     bf16
    #   s2/b2_ref   : (1, Cout)              f32 folded BN2 scale/shift
    #   o_ref       : (1, TH, W, Cout)
    TH = x_strip_ref.shape[1]
    W = x_strip_ref.shape[2]
    Cin = x_strip_ref.shape[3]
    Cmid = w1_ref.shape[1]
    Cout = w2_ref.shape[3]

    s = pl.program_id(1)
    num_s = pl.num_programs(1)

    # ---- stage 1: 1x1 conv + BN + LeakyReLU over strip + halo rows ---------
    # One 2D matmul covering TH+2 rows; bf16 MXU operands, f32 accumulation.
    x_ext = jnp.concatenate(
        [x_top_ref[0], x_strip_ref[0], x_bot_ref[0]], axis=0)   # (TH+2, W, Cin)
    x2d = x_ext.reshape((TH + 2) * W, Cin).astype(jnp.bfloat16)
    y1 = jnp.dot(x2d, w1_ref[...], preferred_element_type=jnp.float32)
    y1 = y1 * s1_ref[...] + b1_ref[...]
    y1 = _leaky(y1)                                             # ((TH+2)*W, Cmid) f32

    # Zero the halo rows that fall outside the image (H-direction zero pad).
    ridx = lax.broadcasted_iota(jnp.int32, ((TH + 2) * W, Cmid), 0)
    kill = jnp.logical_or(
        jnp.logical_and(ridx < W, s == 0),
        jnp.logical_and(ridx >= (TH + 1) * W, s == num_s - 1))
    y1 = jnp.where(kill, 0.0, y1)

    # ---- stage 2: 3x3 "SAME" conv as 9 shifted 2D matmuls ------------------
    # Guard rows of zeros above/below keep every shifted slice in bounds; the
    # W-direction zero pad is handled with column masks (never materialized).
    y1_3d = y1.reshape(TH + 2, W, Cmid)
    zrow = jnp.zeros((1, W, Cmid), jnp.float32)
    y1_g = jnp.concatenate([zrow, y1_3d, zrow], axis=0)         # (TH+4, W, Cmid)
    flat = y1_g.reshape((TH + 4) * W, Cmid)                     # rows of length W

    col = lax.broadcasted_iota(jnp.int32, (TH * W, Cmid), 0) % W
    not_left = col != 0            # dw==0 taps read column w-1 (invalid at w==0)
    not_right = col != (W - 1)     # dw==2 taps read column w+1 (invalid at w==W-1)

    # f32 accumulator stays small because the strip height TH is bounded.
    acc = jnp.zeros((TH * W, Cout), jnp.float32)
    for dh in range(3):
        for dw in range(3):
            off = (dh + 1) * W + (dw - 1)
            a = lax.slice(flat, (off, 0), (off + TH * W, Cmid))  # (TH*W, Cmid) f32
            if dw == 0:
                a = jnp.where(not_left, a, 0.0)
            elif dw == 2:
                a = jnp.where(not_right, a, 0.0)
            acc = acc + jnp.dot(a.astype(jnp.bfloat16), w2_ref[dh, dw],
                                preferred_element_type=jnp.float32)

    # ---- epilogue: BN2 + LeakyReLU + residual, all in f32 ------------------
    y2 = acc * s2_ref[...] + b2_ref[...]
    y2 = _leaky(y2)
    if shortcut:
        y2 = y2 + x_strip_ref[0].reshape(TH * W, Cin).astype(jnp.float32)
    o_ref[0] = y2.reshape(TH, W, Cout).astype(o_ref.dtype)


def _fold_bn(conv_bias, gamma, beta, mean, var, eps=1e-5):
    scale = gamma / jnp.sqrt(var + eps)
    shift = beta + scale * (conv_bias - mean)
    return scale, shift


def _pick_strip_rows(h, target):
    # Largest divisor of h that is <= target (keeps per-step VMEM bounded).
    for th in range(min(target, h), 0, -1):
        if h % th == 0:
            return th
    return h


@functools.partial(jax.jit, static_argnames=("shortcut", "block_rows"))
def basic_block_pallas(x, params, shortcut=True, block_rows=8):
    N, H, W, Cin = x.shape
    Cmid = params["w1"].shape[1]
    Cout = params["w2"].shape[3]
    if shortcut and Cin != Cout:
        raise ValueError("shortcut requires in_channels == out_channels")

    s1, b1 = _fold_bn(params["b1"], params["g1"], params["be1"],
                      params["m1"], params["v1"])
    s2, b2 = _fold_bn(params["b2"], params["g2"], params["be2"],
                      params["m2"], params["v2"])

    TH = _pick_strip_rows(H, block_rows)
    S = H // TH

    w1 = params["w1"].astype(jnp.bfloat16)          # (Cin, Cmid)
    w2 = params["w2"].astype(jnp.bfloat16)          # (3, 3, Cmid, Cout)

    kernel = functools.partial(_fused_basic_block_kernel, shortcut=shortcut)

    grid_spec = pltpu.PrefetchScalarGridSpec(
        num_scalar_prefetch=0,
        grid=(N, S),
        in_specs=[
            # main strip (also the residual)
            pl.BlockSpec((1, TH, W, Cin), lambda n, s: (n, s, 0, 0)),
            # one-row halos above / below the strip (clamped at image edges;
            # out-of-image contributions are masked to zero in the kernel)
            pl.BlockSpec((1, 1, W, Cin),
                         lambda n, s: (n, jnp.maximum(s * TH - 1, 0), 0, 0)),
            pl.BlockSpec((1, 1, W, Cin),
                         lambda n, s: (n, jnp.minimum(s * TH + TH, H - 1), 0, 0)),
            pl.BlockSpec((Cin, Cmid), lambda n, s: (0, 0)),
            pl.BlockSpec((1, Cmid), lambda n, s: (0, 0)),
            pl.BlockSpec((1, Cmid), lambda n, s: (0, 0)),
            pl.BlockSpec((3, 3, Cmid, Cout), lambda n, s: (0, 0, 0, 0)),
            pl.BlockSpec((1, Cout), lambda n, s: (0, 0)),
            pl.BlockSpec((1, Cout), lambda n, s: (0, 0)),
        ],
        out_specs=pl.BlockSpec((1, TH, W, Cout), lambda n, s: (n, s, 0, 0)),
    )

    return pl.pallas_call(
        kernel,
        out_shape=jax.ShapeDtypeStruct((N, H, W, Cout), x.dtype),
        grid_spec=grid_spec,
        compiler_params=pltpu.CompilerParams(
            dimension_semantics=("parallel", "parallel"),
            vmem_limit_bytes=32 * 1024 * 1024),
    )(x, x, x,
      w1, s1.reshape(1, Cmid), b1.reshape(1, Cmid),
      w2, s2.reshape(1, Cout), b2.reshape(1, Cout))


def basic_block_ref(x, params, shortcut=True):
    """Plain-JAX reference with the same bf16 matmul operands / f32 math."""
    s1, b1 = _fold_bn(params["b1"], params["g1"], params["be1"],
                      params["m1"], params["v1"])
    s2, b2 = _fold_bn(params["b2"], params["g2"], params["be2"],
                      params["m2"], params["v2"])
    Cin, Cmid = params["w1"].shape
    dn = ("NHWC", "HWIO", "NHWC")
    y = lax.conv_general_dilated(
        x.astype(jnp.bfloat16),
        params["w1"].reshape(1, 1, Cin, Cmid).astype(jnp.bfloat16),
        (1, 1), "VALID", dimension_numbers=dn,
        preferred_element_type=jnp.float32)
    y = y * s1 + b1
    y = jnp.where(y > 0, y, 0.1 * y)
    y = lax.conv_general_dilated(
        y.astype(jnp.bfloat16),
        params["w2"].astype(jnp.bfloat16),
        (1, 1), "SAME", dimension_numbers=dn,
        preferred_element_type=jnp.float32)
    y = y * s2 + b2
    y = jnp.where(y > 0, y, 0.1 * y)
    if shortcut:
        y = y + x
    return y


if __name__ == "__main__":
    # Small deterministic example: N=2, H=W=16, in_channels=out_channels=16
    N, H, W = 2, 16, 16
    in_channels = 16
    out_channels = 16            # shortcut requires in_channels == out_channels
    cmid = out_channels // 2

    key = jax.random.PRNGKey(0)
    keys = jax.random.split(key, 13)

    x = jax.random.normal(keys[0], (N, H, W, in_channels), jnp.float32)

    params = {
        # conv1 (1x1): HWIO collapsed to (Cin, Cmid)
        "w1": 0.1 * jax.random.normal(keys[1], (in_channels, cmid), jnp.float32),
        "b1": 0.1 * jax.random.normal(keys[2], (cmid,), jnp.float32),
        "g1": 1.0 + 0.1 * jax.random.normal(keys[3], (cmid,), jnp.float32),
        "be1": 0.1 * jax.random.normal(keys[4], (cmid,), jnp.float32),
        "m1": 0.1 * jax.random.normal(keys[5], (cmid,), jnp.float32),
        "v1": 0.5 + jax.random.uniform(keys[6], (cmid,), jnp.float32),
        # conv2 (3x3): HWIO
        "w2": 0.1 * jax.random.normal(keys[7], (3, 3, cmid, out_channels),
                                      jnp.float32),
        "b2": 0.1 * jax.random.normal(keys[8], (out_channels,), jnp.float32),
        "g2": 1.0 + 0.1 * jax.random.normal(keys[9], (out_channels,),
                                            jnp.float32),
        "be2": 0.1 * jax.random.normal(keys[10], (out_channels,), jnp.float32),
        "m2": 0.1 * jax.random.normal(keys[11], (out_channels,), jnp.float32),
        "v2": 0.5 + jax.random.uniform(keys[12], (out_channels,), jnp.float32),
    }

    out = basic_block_pallas(x, params, shortcut=True)
    out = jax.block_until_ready(out)

    ref = basic_block_ref(x, params, shortcut=True)
    assert out.shape == (N, H, W, out_channels)
    max_err = float(jnp.max(jnp.abs(out - ref)))
    assert jnp.allclose(out, ref, atol=3e-3, rtol=3e-3), max_err

    print("KERNEL_OK")
</pallas_src>

<mosaic_0001>
module attributes {stable_mosaic.version = 11 : i64} {
  func.func @_fused_basic_block_kernel(%arg0: i32, %arg1: i32, %arg2: memref<1x8x16x16xf32, #tpu.memory_space<vmem>>, %arg3: memref<1x1x16x16xf32, #tpu.memory_space<vmem>>, %arg4: memref<1x1x16x16xf32, #tpu.memory_space<vmem>>, %arg5: memref<16x8xbf16, #tpu.memory_space<vmem>>, %arg6: memref<1x8xf32, #tpu.memory_space<vmem>>, %arg7: memref<1x8xf32, #tpu.memory_space<vmem>>, %arg8: memref<3x3x8x16xbf16, #tpu.memory_space<vmem>>, %arg9: memref<1x16xf32, #tpu.memory_space<vmem>>, %arg10: memref<1x16xf32, #tpu.memory_space<vmem>>, %arg11: memref<1x8x16x16xf32, #tpu.memory_space<vmem>>) attributes {dimension_semantics = [#tpu.dimension_semantics<parallel>, #tpu.dimension_semantics<parallel>], iteration_bounds = array<i64: 2, 2>, scalar_prefetch = 0 : i64, scratch_operands = 0 : i64, tpu.core_type = #tpu.core_type<tc>, window_params = [{transform_indices = @transform_0, window_bounds = array<i64: 1, 8, 16, 16>}, {transform_indices = @transform_1, window_bounds = array<i64: 1, 1, 16, 16>}, {transform_indices = @transform_2, window_bounds = array<i64: 1, 1, 16, 16>}, {pipeline_mode = #tpu.pipeline_mode<synchronous>, transform_indices = @transform_3, window_bounds = array<i64: 16, 8>}, {pipeline_mode = #tpu.pipeline_mode<synchronous>, transform_indices = @transform_4, window_bounds = array<i64: 1, 8>}, {pipeline_mode = #tpu.pipeline_mode<synchronous>, transform_indices = @transform_5, window_bounds = array<i64: 1, 8>}, {pipeline_mode = #tpu.pipeline_mode<synchronous>, transform_indices = @transform_6, window_bounds = array<i64: 3, 3, 8, 16>}, {pipeline_mode = #tpu.pipeline_mode<synchronous>, transform_indices = @transform_7, window_bounds = array<i64: 1, 16>}, {pipeline_mode = #tpu.pipeline_mode<synchronous>, transform_indices = @transform_8, window_bounds = array<i64: 1, 16>}, {transform_indices = @transform_9, window_bounds = array<i64: 1, 8, 16, 16>}]} {
    %c0 = arith.constant 0 : index
    %c0_0 = arith.constant 0 : index
    %c0_1 = arith.constant 0 : index
    %c0_2 = arith.constant 0 : index
    %0 = vector.load %arg3[%c0, %c0_0, %c0_1, %c0_2] : memref<1x1x16x16xf32, #tpu.memory_space<vmem>>, vector<1x1x16x16xf32>
    %1 = vector.shape_cast %0 : vector<1x1x16x16xf32> to vector<1x16x16xf32>
    %c0_3 = arith.constant 0 : index
    %c0_4 = arith.constant 0 : index
    %c0_5 = arith.constant 0 : index
    %c0_6 = arith.constant 0 : index
    %2 = vector.load %arg2[%c0_3, %c0_4, %c0_5, %c0_6] : memref<1x8x16x16xf32, #tpu.memory_space<vmem>>, vector<1x8x16x16xf32>
    %3 = vector.shape_cast %2 : vector<1x8x16x16xf32> to vector<8x16x16xf32>
    %c0_7 = arith.constant 0 : index
    %c0_8 = arith.constant 0 : index
    %c0_9 = arith.constant 0 : index
    %c0_10 = arith.constant 0 : index
    %4 = vector.load %arg4[%c0_7, %c0_8, %c0_9, %c0_10] : memref<1x1x16x16xf32, #tpu.memory_space<vmem>>, vector<1x1x16x16xf32>
    %5 = vector.shape_cast %4 : vector<1x1x16x16xf32> to vector<1x16x16xf32>
    %6 = tpu.concatenate %1, %3, %5 in 0 : vector<1x16x16xf32>, vector<8x16x16xf32>, vector<1x16x16xf32> -> vector<10x16x16xf32>
    %7 = vector.shape_cast %6 : vector<10x16x16xf32> to vector<160x16xf32>
    %8 = arith.truncf %7 : vector<160x16xf32> to vector<160x16xbf16>
    %c0_11 = arith.constant 0 : index
    %c0_12 = arith.constant 0 : index
    %9 = vector.load %arg5[%c0_11, %c0_12] : memref<16x8xbf16, #tpu.memory_space<vmem>>, vector<16x8xbf16>
    %cst = arith.constant dense<0.000000e+00> : vector<160x8xf32>
    %10 = tpu.matmul %8, %9, %cst {dimension_numbers = #tpu.dot_dimension_numbers<[1], [0], [0], [1], [0, 0, 1, 1], [], []>} : vector<160x16xbf16>, vector<16x8xbf16>, vector<160x8xf32> -> vector<160x8xf32>
    %c0_13 = arith.constant 0 : index
    %c0_14 = arith.constant 0 : index
    %11 = vector.load %arg6[%c0_13, %c0_14] : memref<1x8xf32, #tpu.memory_space<vmem>>, vector<1x8xf32>
    %12 = vector.broadcast %11 : vector<1x8xf32> to vector<160x8xf32>
    %13 = arith.mulf %10, %12 : vector<160x8xf32>
    %c0_15 = arith.constant 0 : index
    %c0_16 = arith.constant 0 : index
    %14 = vector.load %arg7[%c0_15, %c0_16] : memref<1x8xf32, #tpu.memory_space<vmem>>, vector<1x8xf32>
    %15 = vector.broadcast %14 : vector<1x8xf32> to vector<160x8xf32>
    %16 = arith.addf %13, %15 : vector<160x8xf32>
    %cst_17 = arith.constant 0.000000e+00 : f32
    %17 = vector.broadcast %cst_17 : f32 to vector<160x8xf32>
    %18 = arith.cmpf ogt, %16, %17 : vector<160x8xf32>
    %cst_18 = arith.constant 1.000000e-01 : f32
    %19 = vector.broadcast %cst_18 : f32 to vector<160x8xf32>
    %20 = arith.mulf %19, %16 : vector<160x8xf32>
    %21 = arith.select %18, %16, %20 : vector<160x8xi1>, vector<160x8xf32>
    %22 = tpu.iota {dimensions = array<i32: 0>} : vector<160x8xi32>
    %c16_i32 = arith.constant 16 : i32
    %23 = vector.broadcast %c16_i32 : i32 to vector<160x8xi32>
    %24 = arith.cmpi slt, %22, %23 : vector<160x8xi32>
    %c0_i32 = arith.constant 0 : i32
    %25 = arith.cmpi eq, %arg1, %c0_i32 : i32
    %26 = vector.broadcast %25 : i1 to vector<160x8xi1>
    %27 = arith.andi %24, %26 : vector<160x8xi1>
    %c144_i32 = arith.constant 144 : i32
    %28 = vector.broadcast %c144_i32 : i32 to vector<160x8xi32>
    %29 = arith.cmpi sge, %22, %28 : vector<160x8xi32>
    %c1_i32 = arith.constant 1 : i32
    %30 = arith.cmpi eq, %arg1, %c1_i32 : i32
    %31 = vector.broadcast %30 : i1 to vector<160x8xi1>
    %32 = arith.andi %29, %31 : vector<160x8xi1>
    %33 = arith.ori %27, %32 : vector<160x8xi1>
    %cst_19 = arith.constant 0.000000e+00 : f32
    %34 = vector.broadcast %cst_19 : f32 to vector<160x8xf32>
    %35 = arith.select %33, %34, %21 : vector<160x8xi1>, vector<160x8xf32>
    %36 = vector.shape_cast %35 : vector<160x8xf32> to vector<10x16x8xf32>
    %cst_20 = arith.constant 0.000000e+00 : f32
    %37 = vector.broadcast %cst_20 : f32 to vector<1x16x8xf32>
    %38 = tpu.concatenate %37, %36, %37 in 0 : vector<1x16x8xf32>, vector<10x16x8xf32>, vector<1x16x8xf32> -> vector<12x16x8xf32>
    %39 = vector.shape_cast %38 : vector<12x16x8xf32> to vector<192x8xf32>
    %40 = tpu.iota {dimensions = array<i32: 0>} : vector<128x8xi32>
    %c16_i32_21 = arith.constant 16 : i32
    %c0_i32_22 = arith.constant 0 : i32
    %41 = arith.cmpi eq, %c16_i32_21, %c0_i32_22 : i32
    %c1_i32_23 = arith.constant 1 : i32
    %42 = arith.select %41, %c1_i32_23, %c16_i32_21 : i32
    %43 = vector.broadcast %42 : i32 to vector<128x8xi32>
    %44 = arith.remsi %40, %43 : vector<128x8xi32>
    %c0_i32_24 = arith.constant 0 : i32
    %45 = vector.broadcast %c0_i32_24 : i32 to vector<128x8xi32>
    %46 = arith.cmpi ne, %44, %45 : vector<128x8xi32>
    %c0_i32_25 = arith.constant 0 : i32
    %47 = vector.broadcast %c0_i32_25 : i32 to vector<128x8xi32>
    %48 = arith.cmpi slt, %44, %47 : vector<128x8xi32>
    %c0_i32_26 = arith.constant 0 : i32
    %49 = arith.cmpi slt, %42, %c0_i32_26 : i32
    %50 = vector.broadcast %49 : i1 to vector<128x8xi1>
    %51 = vector.broadcast %50 : vector<128x8xi1> to vector<128x8xi1>
    %52 = arith.xori %48, %51 : vector<128x8xi1>
    %53 = arith.andi %52, %46 : vector<128x8xi1>
    %54 = vector.broadcast %42 : i32 to vector<128x8xi32>
    %55 = arith.addi %44, %54 : vector<128x8xi32>
    %56 = arith.select %53, %55, %44 : vector<128x8xi1>, vector<128x8xi32>
    %c0_i32_27 = arith.constant 0 : i32
    %57 = vector.broadcast %c0_i32_27 : i32 to vector<128x8xi32>
    %58 = arith.cmpi ne, %56, %57 : vector<128x8xi32>
    %c15_i32 = arith.constant 15 : i32
    %59 = vector.broadcast %c15_i32 : i32 to vector<128x8xi32>
    %60 = arith.cmpi ne, %56, %59 : vector<128x8xi32>
    %cst_28 = arith.constant 0.000000e+00 : f32
    %61 = vector.broadcast %cst_28 : f32 to vector<128x16xf32>
    %62 = vector.extract_strided_slice %39 {offsets = [15, 0], sizes = [128, 8], strides = [1, 1]} : vector<192x8xf32> to vector<128x8xf32>
    %cst_29 = arith.constant 0.000000e+00 : f32
    %63 = vector.broadcast %cst_29 : f32 to vector<128x8xf32>
    %64 = arith.select %58, %62, %63 : vector<128x8xi1>, vector<128x8xf32>
    %65 = arith.truncf %64 : vector<128x8xf32> to vector<128x8xbf16>
    %c0_30 = arith.constant 0 : index
    %c0_31 = arith.constant 0 : index
    %c0_32 = arith.constant 0 : index
    %c0_33 = arith.constant 0 : index
    %66 = vector.load %arg8[%c0_30, %c0_31, %c0_32, %c0_33] : memref<3x3x8x16xbf16, #tpu.memory_space<vmem>>, vector<1x1x8x16xbf16>
    %67 = vector.shape_cast %66 : vector<1x1x8x16xbf16> to vector<8x16xbf16>
    %cst_34 = arith.constant dense<0.000000e+00> : vector<128x16xf32>
    %68 = tpu.matmul %65, %67, %cst_34 {dimension_numbers = #tpu.dot_dimension_numbers<[1], [0], [0], [1], [0, 0, 1, 1], [], []>} : vector<128x8xbf16>, vector<8x16xbf16>, vector<128x16xf32> -> vector<128x16xf32>
    %69 = arith.addf %61, %68 : vector<128x16xf32>
    %70 = vector.extract_strided_slice %39 {offsets = [16, 0], sizes = [128, 8], strides = [1, 1]} : vector<192x8xf32> to vector<128x8xf32>
    %71 = arith.truncf %70 : vector<128x8xf32> to vector<128x8xbf16>
    %c0_35 = arith.constant 0 : index
    %c1 = arith.constant 1 : index
    %c0_36 = arith.constant 0 : index
    %c0_37 = arith.constant 0 : index
    %72 = vector.load %arg8[%c0_35, %c1, %c0_36, %c0_37] : memref<3x3x8x16xbf16, #tpu.memory_space<vmem>>, vector<1x1x8x16xbf16>
    %73 = vector.shape_cast %72 : vector<1x1x8x16xbf16> to vector<8x16xbf16>
    %cst_38 = arith.constant dense<0.000000e+00> : vector<128x16xf32>
    %74 = tpu.matmul %71, %73, %cst_38 {dimension_numbers = #tpu.dot_dimension_numbers<[1], [0], [0], [1], [0, 0, 1, 1], [], []>} : vector<128x8xbf16>, vector<8x16xbf16>, vector<128x16xf32> -> vector<128x16xf32>
    %75 = arith.addf %69, %74 : vector<128x16xf32>
    %76 = vector.extract_strided_slice %39 {offsets = [17, 0], sizes = [128, 8], strides = [1, 1]} : vector<192x8xf32> to vector<128x8xf32>
    %cst_39 = arith.constant 0.000000e+00 : f32
    %77 = vector.broadcast %cst_39 : f32 to vector<128x8xf32>
    %78 = arith.select %60, %76, %77 : vector<128x8xi1>, vector<128x8xf32>
    %79 = arith.truncf %78 : vector<128x8xf32> to vector<128x8xbf16>
    %c0_40 = arith.constant 0 : index
    %c2 = arith.constant 2 : index
    %c0_41 = arith.constant 0 : index
    %c0_42 = arith.constant 0 : index
    %80 = vector.load %arg8[%c0_40, %c2, %c0_41, %c0_42] : memref<3x3x8x16xbf16, #tpu.memory_space<vmem>>, vector<1x1x8x16xbf16>
    %81 = vector.shape_cast %80 : vector<1x1x8x16xbf16> to vector<8x16xbf16>
    %cst_43 = arith.constant dense<0.000000e+00> : vector<128x16xf32>
    %82 = tpu.matmul %79, %81, %cst_43 {dimension_numbers = #tpu.dot_dimension_numbers<[1], [0], [0], [1], [0, 0, 1, 1], [], []>} : vector<128x8xbf16>, vector<8x16xbf16>, vector<128x16xf32> -> vector<128x16xf32>
    %83 = arith.addf %75, %82 : vector<128x16xf32>
    %84 = vector.extract_strided_slice %39 {offsets = [31, 0], sizes = [128, 8], strides = [1, 1]} : vector<192x8xf32> to vector<128x8xf32>
    %cst_44 = arith.constant 0.000000e+00 : f32
    %85 = vector.broadcast %cst_44 : f32 to vector<128x8xf32>
    %86 = arith.select %58, %84, %85 : vector<128x8xi1>, vector<128x8xf32>
    %87 = arith.truncf %86 : vector<128x8xf32> to vector<128x8xbf16>
    %c1_45 = arith.constant 1 : index
    %c0_46 = arith.constant 0 : index
    %c0_47 = arith.constant 0 : index
    %c0_48 = arith.constant 0 : index
    %88 = vector.load %arg8[%c1_45, %c0_46, %c0_47, %c0_48] : memref<3x3x8x16xbf16, #tpu.memory_space<vmem>>, vector<1x1x8x16xbf16>
    %89 = vector.shape_cast %88 : vector<1x1x8x16xbf16> to vector<8x16xbf16>
    %cst_49 = arith.constant dense<0.000000e+00> : vector<128x16xf32>
    %90 = tpu.matmul %87, %89, %cst_49 {dimension_numbers = #tpu.dot_dimension_numbers<[1], [0], [0], [1], [0, 0, 1, 1], [], []>} : vector<128x8xbf16>, vector<8x16xbf16>, vector<128x16xf32> -> vector<128x16xf32>
    %91 = arith.addf %83, %90 : vector<128x16xf32>
    %92 = vector.extract_strided_slice %39 {offsets = [32, 0], sizes = [128, 8], strides = [1, 1]} : vector<192x8xf32> to vector<128x8xf32>
    %93 = arith.truncf %92 : vector<128x8xf32> to vector<128x8xbf16>
    %c1_50 = arith.constant 1 : index
    %c1_51 = arith.constant 1 : index
    %c0_52 = arith.constant 0 : index
    %c0_53 = arith.constant 0 : index
    %94 = vector.load %arg8[%c1_50, %c1_51, %c0_52, %c0_53] : memref<3x3x8x16xbf16, #tpu.memory_space<vmem>>, vector<1x1x8x16xbf16>
    %95 = vector.shape_cast %94 : vector<1x1x8x16xbf16> to vector<8x16xbf16>
    %cst_54 = arith.constant dense<0.000000e+00> : vector<128x16xf32>
    %96 = tpu.matmul %93, %95, %cst_54 {dimension_numbers = #tpu.dot_dimension_numbers<[1], [0], [0], [1], [0, 0, 1, 1], [], []>} : vector<128x8xbf16>, vector<8x16xbf16>, vector<128x16xf32> -> vector<128x16xf32>
    %97 = arith.addf %91, %96 : vector<128x16xf32>
    %98 = vector.extract_strided_slice %39 {offsets = [33, 0], sizes = [128, 8], strides = [1, 1]} : vector<192x8xf32> to vector<128x8xf32>
    %cst_55 = arith.constant 0.000000e+00 : f32
    %99 = vector.broadcast %cst_55 : f32 to vector<128x8xf32>
    %100 = arith.select %60, %98, %99 : vector<128x8xi1>, vector<128x8xf32>
    %101 = arith.truncf %100 : vector<128x8xf32> to vector<128x8xbf16>
    %c1_56 = arith.constant 1 : index
    %c2_57 = arith.constant 2 : index
    %c0_58 = arith.constant 0 : index
    %c0_59 = arith.constant 0 : index
    %102 = vector.load %arg8[%c1_56, %c2_57, %c0_58, %c0_59] : memref<3x3x8x16xbf16, #tpu.memory_space<vmem>>, vector<1x1x8x16xbf16>
    %103 = vector.shape_cast %102 : vector<1x1x8x16xbf16> to vector<8x16xbf16>
    %cst_60 = arith.constant dense<0.000000e+00> : vector<128x16xf32>
    %104 = tpu.matmul %101, %103, %cst_60 {dimension_numbers = #tpu.dot_dimension_numbers<[1], [0], [0], [1], [0, 0, 1, 1], [], []>} : vector<128x8xbf16>, vector<8x16xbf16>, vector<128x16xf32> -> vector<128x16xf32>
    %105 = arith.addf %97, %104 : vector<128x16xf32>
    %106 = vector.extract_strided_slice %39 {offsets = [47, 0], sizes = [128, 8], strides = [1, 1]} : vector<192x8xf32> to vector<128x8xf32>
    %cst_61 = arith.constant 0.000000e+00 : f32
    %107 = vector.broadcast %cst_61 : f32 to vector<128x8xf32>
    %108 = arith.select %58, %106, %107 : vector<128x8xi1>, vector<128x8xf32>
    %109 = arith.truncf %108 : vector<128x8xf32> to vector<128x8xbf16>
    %c2_62 = arith.constant 2 : index
    %c0_63 = arith.constant 0 : index
    %c0_64 = arith.constant 0 : index
    %c0_65 = arith.constant 0 : index
    %110 = vector.load %arg8[%c2_62, %c0_63, %c0_64, %c0_65] : memref<3x3x8x16xbf16, #tpu.memory_space<vmem>>, vector<1x1x8x16xbf16>
    %111 = vector.shape_cast %110 : vector<1x1x8x16xbf16> to vector<8x16xbf16>
    %cst_66 = arith.constant dense<0.000000e+00> : vector<128x16xf32>
    %112 = tpu.matmul %109, %111, %cst_66 {dimension_numbers = #tpu.dot_dimension_numbers<[1], [0], [0], [1], [0, 0, 1, 1], [], []>} : vector<128x8xbf16>, vector<8x16xbf16>, vector<128x16xf32> -> vector<128x16xf32>
    %113 = arith.addf %105, %112 : vector<128x16xf32>
    %114 = vector.extract_strided_slice %39 {offsets = [48, 0], sizes = [128, 8], strides = [1, 1]} : vector<192x8xf32> to vector<128x8xf32>
    %115 = arith.truncf %114 : vector<128x8xf32> to vector<128x8xbf16>
    %c2_67 = arith.constant 2 : index
    %c1_68 = arith.constant 1 : index
    %c0_69 = arith.constant 0 : index
    %c0_70 = arith.constant 0 : index
    %116 = vector.load %arg8[%c2_67, %c1_68, %c0_69, %c0_70] : memref<3x3x8x16xbf16, #tpu.memory_space<vmem>>, vector<1x1x8x16xbf16>
    %117 = vector.shape_cast %116 : vector<1x1x8x16xbf16> to vector<8x16xbf16>
    %cst_71 = arith.constant dense<0.000000e+00> : vector<128x16xf32>
    %118 = tpu.matmul %115, %117, %cst_71 {dimension_numbers = #tpu.dot_dimension_numbers<[1], [0], [0], [1], [0, 0, 1, 1], [], []>} : vector<128x8xbf16>, vector<8x16xbf16>, vector<128x16xf32> -> vector<128x16xf32>
    %119 = arith.addf %113, %118 : vector<128x16xf32>
    %120 = vector.extract_strided_slice %39 {offsets = [49, 0], sizes = [128, 8], strides = [1, 1]} : vector<192x8xf32> to vector<128x8xf32>
    %cst_72 = arith.constant 0.000000e+00 : f32
    %121 = vector.broadcast %cst_72 : f32 to vector<128x8xf32>
    %122 = arith.select %60, %120, %121 : vector<128x8xi1>, vector<128x8xf32>
    %123 = arith.truncf %122 : vector<128x8xf32> to vector<128x8xbf16>
    %c2_73 = arith.constant 2 : index
    %c2_74 = arith.constant 2 : index
    %c0_75 = arith.constant 0 : index
    %c0_76 = arith.constant 0 : index
    %124 = vector.load %arg8[%c2_73, %c2_74, %c0_75, %c0_76] : memref<3x3x8x16xbf16, #tpu.memory_space<vmem>>, vector<1x1x8x16xbf16>
    %125 = vector.shape_cast %124 : vector<1x1x8x16xbf16> to vector<8x16xbf16>
    %cst_77 = arith.constant dense<0.000000e+00> : vector<128x16xf32>
    %126 = tpu.matmul %123, %125, %cst_77 {dimension_numbers = #tpu.dot_dimension_numbers<[1], [0], [0], [1], [0, 0, 1, 1], [], []>} : vector<128x8xbf16>, vector<8x16xbf16>, vector<128x16xf32> -> vector<128x16xf32>
    %127 = arith.addf %119, %126 : vector<128x16xf32>
    %c0_78 = arith.constant 0 : index
    %c0_79 = arith.constant 0 : index
    %128 = vector.load %arg9[%c0_78, %c0_79] : memref<1x16xf32, #tpu.memory_space<vmem>>, vector<1x16xf32>
    %129 = vector.broadcast %128 : vector<1x16xf32> to vector<128x16xf32>
    %130 = arith.mulf %127, %129 : vector<128x16xf32>
    %c0_80 = arith.constant 0 : index
    %c0_81 = arith.constant 0 : index
    %131 = vector.load %arg10[%c0_80, %c0_81] : memref<1x16xf32, #tpu.memory_space<vmem>>, vector<1x16xf32>
    %132 = vector.broadcast %131 : vector<1x16xf32> to vector<128x16xf32>
    %133 = arith.addf %130, %132 : vector<128x16xf32>
    %cst_82 = arith.constant 0.000000e+00 : f32
    %134 = vector.broadcast %cst_82 : f32 to vector<128x16xf32>
    %135 = arith.cmpf ogt, %133, %134 : vector<128x16xf32>
    %cst_83 = arith.constant 1.000000e-01 : f32
    %136 = vector.broadcast %cst_83 : f32 to vector<128x16xf32>
    %137 = arith.mulf %136, %133 : vector<128x16xf32>
    %138 = arith.select %135, %133, %137 : vector<128x16xi1>, vector<128x16xf32>
    %c0_84 = arith.constant 0 : index
    %c0_85 = arith.constant 0 : index
    %c0_86 = arith.constant 0 : index
    %c0_87 = arith.constant 0 : index
    %139 = vector.load %arg2[%c0_84, %c0_85, %c0_86, %c0_87] : memref<1x8x16x16xf32, #tpu.memory_space<vmem>>, vector<1x8x16x16xf32>
    %140 = vector.shape_cast %139 : vector<1x8x16x16xf32> to vector<8x16x16xf32>
    %141 = vector.shape_cast %140 : vector<8x16x16xf32> to vector<128x16xf32>
    %142 = arith.addf %138, %141 : vector<128x16xf32>
    %143 = vector.shape_cast %142 : vector<128x16xf32> to vector<8x16x16xf32>
    %c0_88 = arith.constant 0 : index
    %c0_89 = arith.constant 0 : index
    %c0_90 = arith.constant 0 : index
    %c0_91 = arith.constant 0 : index
    %144 = vector.load %arg11[%c0_88, %c0_89, %c0_90, %c0_91] : memref<1x8x16x16xf32, #tpu.memory_space<vmem>>, vector<1x8x16x16xf32>
    %145 = vector.shape_cast %144 : vector<1x8x16x16xf32> to vector<8x16x16xf32>
    %146 = vector.shape_cast %143 : vector<8x16x16xf32> to vector<1x8x16x16xf32>
    tpu.vector_store %arg11[%c0_88, %c0_89, %c0_90, %c0_91], %146 {strides = array<i32>} : memref<1x8x16x16xf32, #tpu.memory_space<vmem>>, vector<1x8x16x16xf32>,
    return
  }
  func.func @transform_0(%arg0: i32, %arg1: i32) -> (i32, i32, i32, i32) {
    %c0_i32 = arith.constant 0 : i32
    %c0_i32_0 = arith.constant 0 : i32
    %c0_i32_1 = arith.constant 0 : i32
    return %arg0, %arg1, %c0_i32, %c0_i32_0 : i32, i32, i32, i32
  }
  func.func @transform_1(%arg0: i32, %arg1: i32) -> (i32, i32, i32, i32) {
    %c8_i32 = arith.constant 8 : i32
    %0 = arith.muli %arg1, %c8_i32 : i32
    %c1_i32 = arith.constant 1 : i32
    %1 = arith.subi %0, %c1_i32 : i32
    %c0_i32 = arith.constant 0 : i32
    %2 = arith.maxsi %1, %c0_i32 : i32
    %c0_i32_0 = arith.constant 0 : i32
    %c0_i32_1 = arith.constant 0 : i32
    %c0_i32_2 = arith.constant 0 : i32
    return %arg0, %2, %c0_i32_0, %c0_i32_1 : i32, i32, i32, i32
  }
  func.func @transform_2(%arg0: i32, %arg1: i32) -> (i32, i32, i32, i32) {
    %c8_i32 = arith.constant 8 : i32
    %0 = arith.muli %arg1, %c8_i32 : i32
    %c8_i32_0 = arith.constant 8 : i32
    %1 = arith.addi %0, %c8_i32_0 : i32
    %c15_i32 = arith.constant 15 : i32
    %2 = arith.minsi %1, %c15_i32 : i32
    %c0_i32 = arith.constant 0 : i32
    %c0_i32_1 = arith.constant 0 : i32
    %c0_i32_2 = arith.constant 0 : i32
    return %arg0, %2, %c0_i32, %c0_i32_1 : i32, i32, i32, i32
  }
  func.func @transform_3(%arg0: i32, %arg1: i32) -> (i32, i32) {
    %c0_i32 = arith.constant 0 : i32
    %c0_i32_0 = arith.constant 0 : i32
    %c0_i32_1 = arith.constant 0 : i32
    return %c0_i32, %c0_i32_0 : i32, i32
  }
  func.func @transform_4(%arg0: i32, %arg1: i32) -> (i32, i32) {
    %c0_i32 = arith.constant 0 : i32
    %c0_i32_0 = arith.constant 0 : i32
    %c0_i32_1 = arith.constant 0 : i32
    return %c0_i32, %c0_i32_0 : i32, i32
  }
  func.func @transform_5(%arg0: i32, %arg1: i32) -> (i32, i32) {
    %c0_i32 = arith.constant 0 : i32
    %c0_i32_0 = arith.constant 0 : i32
    %c0_i32_1 = arith.constant 0 : i32
    return %c0_i32, %c0_i32_0 : i32, i32
  }
  func.func @transform_6(%arg0: i32, %arg1: i32) -> (i32, i32, i32, i32) {
    %c0_i32 = arith.constant 0 : i32
    %c0_i32_0 = arith.constant 0 : i32
    %c0_i32_1 = arith.constant 0 : i32
    %c0_i32_2 = arith.constant 0 : i32
    %c0_i32_3 = arith.constant 0 : i32
    return %c0_i32, %c0_i32_0, %c0_i32_1, %c0_i32_2 : i32, i32, i32, i32
  }
  func.func @transform_7(%arg0: i32, %arg1: i32) -> (i32, i32) {
    %c0_i32 = arith.constant 0 : i32
    %c0_i32_0 = arith.constant 0 : i32
    %c0_i32_1 = arith.constant 0 : i32
    return %c0_i32, %c0_i32_0 : i32, i32
  }
  func.func @transform_8(%arg0: i32, %arg1: i32) -> (i32, i32) {
    %c0_i32 = arith.constant 0 : i32
    %c0_i32_0 = arith.constant 0 : i32
    %c0_i32_1 = arith.constant 0 : i32
    return %c0_i32, %c0_i32_0 : i32, i32
  }
  func.func @transform_9(%arg0: i32, %arg1: i32) -> (i32, i32, i32, i32) {
    %c0_i32 = arith.constant 0 : i32
    %c0_i32_0 = arith.constant 0 : i32
    %c0_i32_1 = arith.constant 0 : i32
    return %arg0, %arg1, %c0_i32, %c0_i32_0 : i32, i32, i32, i32
  }
}

</mosaic_0001>

<bundles_post_ra>
// kernel: basic_block_pallas.1
= control target key start
LH: loop header
LB: loop body
LE: loop exit
PB: predicated region body
PF: predicated region fallthrough
CT: control target
= control target key end

     0   :  { %s4204_s0 = inlined_call_operand.hbm [shape: f32[2,16,16,16], index: 0, kind: input, shape index: {}, may-alias: {0,1,2}]   ;;  %s4205_s1 = inlined_call_operand.hbm [shape: f32[2,16,16,16], index: 1, kind: input, shape index: {}, may-alias: {0,1,2}]   ;;  %s4206_s2 = inlined_call_operand.hbm [shape: f32[2,16,16,16], index: 2, kind: input, shape index: {}, may-alias: {0,1,2}]   ;;  %s4207_s3 = inlined_call_operand.vmem [shape: bf16[16,8], index: 3, kind: input, shape index: {}]   ;;  %s4208_s4 = inlined_call_operand.vmem [shape: f32[1,8], index: 4, kind: input, shape index: {}]   ;;  %s4209_s5 = inlined_call_operand.vmem [shape: f32[1,8], index: 5, kind: input, shape index: {}]   ;;  %s4210_s6 = inlined_call_operand.vmem [shape: bf16[3,3,8,16], index: 6, kind: input, shape index: {}]   ;;  %s4211_s7 = inlined_call_operand.vmem [shape: f32[1,16], index: 7, kind: input, shape index: {}]   ;;  %s4212_s8 = inlined_call_operand.vmem [shape: f32[1,16], index: 8, kind: input, shape index: {}]   ;;  %s4213_s9 = inlined_call_operand.hbm [shape: f32[2,16,16,16], index: 9, kind: output, shape index: {}]  }
   0x1   :  { %4232 = sst [smem:[#allocation26_spill]] %s4204_s0 }
   0x2   :  { %4233 = sst [smem:[#allocation27_spill]] %s4205_s1 }
   0x3   :  { %4234 = sst [smem:[#allocation28_spill]] %s4207_s3 }
   0x4   :  { %4235 = sst [smem:[#allocation29_spill]] %s4208_s4 }
   0x5   :  { %4236 = sst [smem:[#allocation30_spill]] %s4209_s5 }
   0x6   :  { %4237 = sst [smem:[#allocation31_spill]] %s4210_s6 }
   0x7   :  { %4238 = sst [smem:[#allocation32_spill]] %s4211_s7 }
   0x8   :  { %4239 = sst [smem:[#allocation33_spill]] %s4212_s8 }
   0x9   :  { %4240 = sst [smem:[#allocation34_spill]] %s4213_s9 }
   0xa   :  { %14 = vsyncpa [#allocation3], 0 }
   0xb   :  { %16 = vsyncpa [#allocation3 + $0x1], 0 }
   0xc   :  { %17 = vsyncpa [#allocation6], 0 }
   0xd   :  { %19 = vsyncpa [#allocation6 + $0x1], 0 }
   0xe   :  { %20 = vsyncpa [#allocation4], 0 }
   0xf   :  { %22 = vsyncpa [#allocation4 + $0x1], 0  ;;  %s3054_s30 = smov 0   ;;  %s3056_s10 = smov 0  }
  0x10   :  { %s3058_s11 = smov 0   ;;  %s3060_s12 = smov 0  }
  0x11   :  { %s3062_s13 = smov 0   ;;  %s3064_s14 = smov 0  }
  0x12   :  { %s3066_s15 = smov 0   ;;  %s3068_s16 = smov 0  }
  0x13   :  { %s3070_s17 = smov 0   ;;  %s3072_s18 = smov 0  }
  0x14   :  { %s3074_s19 = smov 0   ;;  %s3076_s20 = smov 0  }
  0x15   :  { %s3078_s21 = smov 0   ;;  %s3080_s22 = smov 0  }
  0x16 LB: > { %4241 = sst [smem:[#allocation13_spill]] %s2965_s14  ;;  %s3125_s23 = sadd.s32 4294967295, %s2997_s22   ;;  %s2997_s22 = sphi %s3080_s22, %s28_s22   ;;  %s2993_s21 = sphi %s3078_s21, %s4323_s21   ;;  %s2989_s20 = sphi %s3076_s20, %s4322_s20   ;;  %s2985_s19 = sphi %s3074_s19, %s4321_s19   ;;  %s2981_s18 = sphi %s3072_s18, %s4320_s18   ;;  %s2977_s17 = sphi %s3070_s17, %s4332_s17   ;;  %s2973_s16 = sphi %s3068_s16, %s4331_s16   ;;  %s2969_s15 = sphi %s3066_s15, %s4330_s15   ;;  %s2965_s14 = sphi %s3064_s14, %s4317_s14   ;;  %s2961_s13 = sphi %s3062_s13, %s4329_s13   ;;  %s2957_s12 = sphi %s3060_s12, %s4328_s12   ;;  %s2953_s11 = sphi %s3058_s11, %s4327_s11   ;;  %s2949_s10 = sphi %s3056_s10, %s4326_s10   ;;  %s2945_s30 = sphi %s3054_s30, %s4325_s30  }
  0x17   : > { %4242 = sst [smem:[#allocation14_spill]] %s2969_s15  ;;  %s37_s24 = sadd.s32 1, %s2989_s20 }
  0x18   : > { %4243 = sst [smem:[#allocation15_spill]] %s2977_s17  ;;  %p38_p0 = scmp.ge.s32.totalorder %s37_s24, 2 }
  0x19   : > { %4244 = sst [smem:[#allocation16_spill]] %s2981_s18  ;;  %s40_s25 = sadd.s32 1, %s2993_s21 }
  0x1a   : > { %4245 = sst [smem:[#allocation17_spill]] %s2985_s19  ;;  %p57_p1 = scmp.eq.s32.totalorder %s2997_s22, 0 }
  0x1b   : > { %4246 = sst [smem:[#allocation18_spill]] %s2989_s20  ;;  %p63_p2 = scmp.eq.s32.totalorder %s3125_s23, 0 }
  0x1c   : > { %4247 = sst [smem:[#allocation19_spill]] %s2993_s21  ;;  %s4334_s24 = smov (%p38_p0, %s37_s24), 0 }
  0x1d   : > { %4248 = sst [smem:[#allocation20_spill]] %s4334_s24  ;;  %s4336_s25 = smov (!%p38_p0, %s40_s25), %s2993_s21 }
  0x1e   : > { %s45_s26 = ssub.s32 %s2989_s20, %s4334_s24  ;;  %s2457_s27 = sshll.u32 %s2989_s20, 3 }
  0x1f   : > { %p42_p3 = scmp.ge.s32.totalorder %s4336_s25, 2  ;;  %s2458_s28 = sadd.s32 4294967295, %s2457_s27 }
  0x20   : > { %p74_p4 = scmp.gt.s32.totalorder %s2458_s28, 0  ;;  %s2459_s29 = sshll.u32 %s4334_s24, 3 }
  0x21   : > { %s4338_s25 = smov (%p42_p3, %s4336_s25), 0  ;;  %s2460_s19 = sadd.s32 4294967295, %s2459_s29 }
  0x22   : > { %4249 = sst [smem:[#allocation21_spill]] %s4338_s25  ;;  %s4340_s28 = smov (!%p74_p4, %s2458_s28), 0 }
  0x23   : > { %s3142_s9 = ssub.s32 %s2993_s21, %s4338_s25  ;;  %p78_p5 = scmp.gt.s32.totalorder %s2460_s19, 0 }
  0x24   : > { %s3145_s8 = sor.u32 %s45_s26, %s3142_s9  ;;  %s85_s7 = sadd.s32 1, %s2965_s14 }
  0x25   : > { %p47_p6 = scmp.eq.s32.totalorder %s3145_s8, 0  ;;  %s4342_s19 = smov (!%p78_p5, %s2460_s19), 0 }
  0x26   : > { %p92_p7 = scmp.ne.s32.totalorder %s2965_s14, %s2961_s13  ;;  %p98_p8 = scmp.ne.s32.totalorder %s2961_s13, %s2957_s12 }
  0x27   : > { %s81_s24 = ssub.s32 %s4340_s28, %s4342_s19  ;;  %s3153_s25 = sadd.s32 8, %s2457_s27 }
  0x28   : > { %s82_s5 = sor.u32 %s81_s24, %s3142_s9  ;;  %p3158_p9 = por %p92_p7, %p57_p1 }
  0x29   : > { %p83_p10 = scmp.eq.s32.totalorder %s82_s5, 0  ;;  %p3164_p11 = por %p98_p8, %p63_p2 }
  0x2a   : > { %s3169_s12 = sadd.s32 8, %s2459_s29  ;;  %p4230_p0 = scmp.lt.s32.totalorder %s2997_s22, 4 }
  0x2b   : > { %s4251_s4 = scalar_select %p3164_p11, 1, 0 }
  0x2c   : > { %s3172_s19 = scalar_select %p83_p10, %s2965_s14, %s85_s7  }
  0x2d   : > { %4252 = sst [smem:[#allocation22_spill]] %s4251_s4  ;;  %s3177_s24 = sshll.u32 %s2993_s21, 5 }
  0x2e   : > { %4253 = sst [smem:[#allocation23_spill]] %s3172_s19  ;;  %s355_s5 = sand.u32 1, %s2997_s22  }
  0x2f   : > { %s357_s27 = sand.u32 1, %s2965_s14   ;;  %s2473_s6 = sshll.u32 %s4340_s28, 1 }
  0x30   : > { %s2470_s18 = sshll.u32 %s357_s27, 4  ;;  %s368_s3 = sadd.s32 %s2473_s6, %s3177_s24 }
  0x31   : > { %s359_s4 = scalar_lea.vmem [#allocation5], %s2470_s18  ;;  %s2475_s7 = sshll.u32 %s368_s3, 3 }
  0x32   : > { %s373_s29 = sshll.u32 %s359_s4, 4  ;;  %s4254_s1 = sld [smem:[#allocation27_spill]]  ;;  %s374_s29 = int_to_ptr.vmem [resolvable:$true] %s373_s29 }
  0x33   : > { %p2604_p3 = pnand %p4230_p0, %p3158_p9  ;;  %p2481_p4 = scmp.ge.s32.totalorder %s2997_s22, 1 }
  0x34   : > { %s3190_s4 = scalar_lea.sflag [#allocation6], %s355_s5  ;;  %s4223_s3 = smov 128  }
  0x35   : > { %s4225_s18 = smov 8   ;;  %p409_p5 = scmp.lt.s32.totalorder %s2997_s22, 5 }
  0x36   : > { %s49_s28 = sadd.s32 1, %s2977_s17  ;;  %p56_p8 = scmp.ne.s32.totalorder %s2977_s17, %s2973_s16 }
  0x37   : > { %p3197_p7 = pnand %p2481_p4, %p409_p5  ;;  %p62_p9 = scmp.ne.s32.totalorder %s2973_s16, %s2969_s15 }
  0x38   : > { %s370_s14 = scalar_lea.hbm %s4254_s1, %s2475_s7  ;;  %p286_p10 = scmp.eq.s32.totalorder %s3125_s23, 3 }
  0x39   : > { %s371_s6 = sshll.u32 %s370_s14, 4  ;;  %s2456_s14 = sadd.s32 4294967294, %s2997_s22   ;;  %s372_s6 = int_to_ptr.hbm [resolvable:$true] %s371_s6 }
  0x3a   : > { %2606 = dma.hbm_to_vmem [thread:$0]  (!%p2604_p3), %s372_s6, 256, %s374_s29, %s3190_s4, %s4223_s3, %s4223_s3, %s4225_s18  }
  0x3b   : > { %s3206_s26 = scalar_select %p47_p6, %s2977_s17, %s49_s28  }
  0x3c   : > { %p292_p13 = scmp.eq.s32.totalorder %s2456_s14, 3  ;;  %p3215_p12 = por %p57_p1, %p56_p8 }
  0x3d   : > { %4256 = sst [smem:[#allocation24_spill]] %s3206_s26  ;;  %p3221_p3 = por %p63_p2, %p62_p9 }
  0x3e   : > { %p3225_p4 = por %p286_p10, %p56_p8  ;;  %p3229_p6 = por %p292_p13, %p62_p9 }
  0x3f   : > { %s330_s29 = sand.u32 1, %s2977_s17   ;;  %s2587_s7 = sshll.u32 %s2989_s20, 4 }
  0x40   : > { %s4260_s27 = scalar_select %p3229_p6, 1, 0 }
  0x41   : > { %s2465_s6 = sshll.u32 %s330_s29, 7  ;;  %s340_s14 = sadd.s32 %s2587_s7, %s3177_s24 }
  0x42   : > { %4261 = sst [smem:[#allocation25_spill]] %s4260_s27  ;;  %s2469_s28 = sshll.u32 %s340_s14, 3 }
  0x43   : > { %s334_s3 = scalar_lea.vmem [#allocation2], %s2465_s6  ;;  %s4262_s0 = sld [smem:[#allocation26_spill]] }
  0x44   : > { %s345_s18 = sshll.u32 %s334_s3, 4  ;;  %p2601_p13 = pnand %p4230_p0, %p3215_p12  ;;  %s346_s18 = int_to_ptr.vmem [resolvable:$true] %s345_s18 }
  0x45   : > { %s331_s7 = scalar_lea.sflag [#allocation3], %s330_s29  ;;  %s4263_s20 = smov 8  }
  0x46   : > { %s4264_s14 = smov 128   ;;  %p4265_p5 = scmp.lt.s32.totalorder %s3153_s25, 15 }
  0x47   : > { %p4266_p8 = scmp.lt.s32.totalorder %s3169_s12, 15  ;;  %s121_s1 = sadd.s32 1, %s2953_s11 }
  0x48   : > { %s4344_s25 = smov (!%p4265_p5, %s3153_s25), 15  ;;  %p128_p9 = scmp.ne.s32.totalorder %s2953_s11, %s2949_s10 }
  0x49   : > { %s342_s27 = scalar_lea.hbm %s4262_s0, %s2469_s28  ;;  %s4346_s12 = smov (!%p4266_p8, %s3169_s12), 15 }
  0x4a   : > { %s343_s17 = sshll.u32 %s342_s27, 4  ;;  %s117_s3 = ssub.s32 %s4344_s25, %s4346_s12  ;;  %s344_s17 = int_to_ptr.hbm [resolvable:$true] %s343_s17 }
  0x4b   : > { %2603 = dma.hbm_to_vmem [thread:$0]  (!%p2601_p13), %s344_s17, 2048, %s346_s18, %s331_s7, %s4264_s14, %s4264_s14, %s4263_s20  }
  0x4c   : > { %p134_p10 = scmp.ne.s32.totalorder %s2949_s10, %s2945_s30  ;;  %s118_s26 = sor.u32 %s117_s3, %s3142_s9 }
  0x4d   : > { %p3260_p12 = por %p128_p9, %p57_p1  ;;  %p119_p0 = scmp.eq.s32.totalorder %s118_s26, 0 }
  0x4e   : > { %p3266_p13 = por %p134_p10, %p63_p2  ;;  %s385_s18 = sand.u32 1, %s2953_s11  }
  0x4f   : > { %s2478_s27 = sshll.u32 %s4344_s25, 1  ;;  %s2476_s30 = sshll.u32 %s385_s18, 4 }
  0x50   : > { %s3272_s29 = scalar_select %p119_p0, %s2953_s11, %s121_s1  }
  0x51   : > { %s396_s9 = sadd.s32 %s2478_s27, %s3177_s24  ;;  %s387_s3 = scalar_lea.vmem [#allocation7], %s2476_s30 }
  0x52   : > { %s2480_s12 = sshll.u32 %s396_s9, 3  ;;  %s401_s0 = sshll.u32 %s387_s3, 4  ;;  %s402_s0 = int_to_ptr.vmem [resolvable:$true] %s401_s0 }
  0x53   : > { %s398_s7 = scalar_lea.hbm %s4206_s2, %s2480_s12  ;;  %p4269_p1 = scmp.lt.s32.totalorder %s2997_s22, 4 }
  0x54   : > { %s399_s15 = sshll.u32 %s398_s7, 4  ;;  %413 = sbr.rel (%p3197_p7) target bundleno = 780 (0x30c), region = 56  ;;  %s400_s15 = int_to_ptr.hbm [resolvable:$true] %s399_s15 }
  0x55   : > { %p2607_p2 = pnand %p4269_p1, %p3260_p12  ;;  %s3289_s25 = sand.u32 (!%p3197_p7), 1, %s2973_s16  }
  0x56   : > { %s2482_s24 = sshll.u32 (!%p3197_p7), %s3289_s25, 7  ;;  %s416_s1 = scalar_lea.sflag (!%p3197_p7), [#allocation3], %s3289_s25 }
  0x57   : > { %2609 = dma.hbm_to_vmem [thread:$0]  (!%p2607_p2), %s400_s15, 256, %s402_s0, %s3190_s4, %s4264_s14, %s4264_s14, %s4263_s20  }
  0x58   : > { %s3295_s26 = scalar_lea.vmem (!%p3197_p7), [#allocation2], %s2482_s24 }
  0x59   : > { %2928 = dma.done.wait (%p3221_p3), %s416_s1, 2048  }
  0x5a   : > { %2930 = vsyncadd (%p3221_p3), %s416_s1, 4294965248  ;;  %s425_s15 = sand.u32 1, %s3125_s23   ;;  %s427_s20 = sand.u32 1, %s2961_s13  }
  0x5b   : > { %s2483_s4 = sshll.u32 %s427_s20, 4  ;;  %s426_s21 = scalar_lea.sflag [#allocation6], %s425_s15 }
  0x5c   : > { %s429_s14 = scalar_lea.vmem [#allocation5], %s2483_s4 }
  0x5d   : > { %2932 = dma.done.wait (%p3164_p11), %s426_s21, 256  }
  0x5e   : > { %2934 = vsyncadd (%p3164_p11), %s426_s21, 4294967040  ;;  %s437_s19 = sand.u32 1, %s2949_s10  }
  0x5f   : > { %s3308_s18 = sshll.u32 %s437_s19, 4 }
  0x60   : > { %s439_s5 = scalar_lea.vmem [#allocation7], %s3308_s18 }
  0x61   : > { %2936 = dma.done.wait (%p3266_p13), %s426_s21, 256  }
  0x62   : > { %2938 = vsyncadd (%p3266_p13), %s426_s21, 4294967040  ;;  %s4271_s30 = sld [smem:[#allocation28_spill]]  ;;  %v496_v1 = vld [vmem:[%s429_s14] sm:$0xff]  ;;  %v497_v2 = vld [vmem:[%s429_s14 + $0x8] sm:$0xff]  ;;  %vm534_vm0 = vcmask 130048   ;;  %vm1232_vm1 = vcmask 1043456   ;;  %v732_v41 = vlaneseq }
  0x63   : > { %v516_v3 = vpack.c.bf16 %v497_v2, %v496_v1  ;;  %v498_v4 = vld [vmem:[%s3295_s26] sm:$0xff]  ;;  %v499_v5 = vld [vmem:[%s3295_s26 + $0x8] sm:$0xff]  ;;  %v500_v7 = vld [vmem:[%s3295_s26 + $0x10] sm:$0xff]  ;;  %s4272_s12 = sld [smem:[#allocation31_spill]]  ;;  %vm1207_vm5 = vcmask 64512   ;;  %vm1362_vm6 = vcmask 1046528  }
  0x64   : > { %v517_v6 = vpack.c.bf16 %v499_v5, %v498_v4  ;;  %v501_v8 = vld [vmem:[%s3295_s26 + $0x18] sm:$0xff]  ;;  %v502_v10 = vld [vmem:[%s3295_s26 + $0x20] sm:$0xff]  ;;  %v503_v11 = vld [vmem:[%s3295_s26 + $0x28] sm:$0xff]  ;;  %s4274_s28 = sld [smem:[#allocation16_spill]]  ;;  %v3370_v48 = vshrl.u32 %v732_v41, 7  ;;  %v3001_v5 = vmov 0.0  }
  0x65   : > { %v518_v9 = vpack.c.bf16 %v501_v8, %v500_v7  ;;  %v519_v12 = vpack.c.bf16 %v503_v11, %v502_v10  ;;  %v504_v13 = vld [vmem:[%s3295_s26 + $0x30] sm:$0xff]  ;;  %v505_v14 = vld [vmem:[%s3295_s26 + $0x38] sm:$0xff]  ;;  %v506_v16 = vld [vmem:[%s3295_s26 + $0x40] sm:$0xff]  ;;  %s4275_s1 = sld [smem:[#allocation29_spill]]  ;;  %vm1122_vm9 = vcmask 1040384   ;;  %s4044_s23 = scalar_lea.vmem [#allocation8], %s2482_s24 }
  0x66   : > { %v520_v15 = vpack.c.bf16 %v505_v14, %v504_v13  ;;  %v507_v17 = vld [vmem:[%s3295_s26 + $0x48] sm:$0xff]  ;;  %v508_v19 = vld [vmem:[%s3295_s26 + $0x50] sm:$0xff]  ;;  %v509_v20 = vld [vmem:[%s3295_s26 + $0x58] sm:$0xff]  ;;  %s4276_s21 = sld [smem:[#allocation30_spill]]  ;;  %v734_v53 = vadd.s32 8, %v3370_v48  ;;  %v885_v4 = vand.u32 15, %v3370_v48 }
  0x67   : > { %v521_v18 = vpack.c.bf16 %v507_v17, %v506_v16  ;;  %v522_v21 = vpack.c.bf16 %v509_v20, %v508_v19  ;;  %v510_v22 = vld [vmem:[%s3295_s26 + $0x60] sm:$0xff]  ;;  %v511_v23 = vld [vmem:[%s3295_s26 + $0x68] sm:$0xff]  ;;  %v512_v27 = vld [vmem:[%s3295_s26 + $0x70] sm:$0xff]  ;;  %s4311_s24 = sld [smem:[#allocation17_spill]]  ;;  %s2298_s15 = scalar_lea.sflag [#allocation4], %s3289_s25 }
  0x68   : > { %v2588_v0 = vld [vmem:[%s4271_s30] sm:$0xff]  ;;  %v523_v25 = vpack.c.bf16 %v511_v23, %v510_v22  ;;  %v513_v28 = vld [vmem:[%s3295_s26 + $0x78] sm:$0xff]  ;;  %v892_v60 = vand.u32 15, %v734_v53  ;;  %vm3396_vm11 = vcmp.ne.s32.totalorder %v885_v4, 0  ;;  %v736_v23 = vadd.s32 24, %v3370_v48  ;;  %s4312_s7 = sld [smem:[#allocation34_spill]] }
  0x69   : > { %572 = vmatpush.bf16.msra.mxu0 %v2588_v0  ;;  %s4273_s6 = smov %s4272_s12  ;;  %v2500_v24 = vld [vmem:[%s4272_s12 + $0x4] sm:$0xf]  ;;  %v524_v32 = vpack.c.bf16 %v513_v28, %v512_v27  ;;  %v515_v45 = vld [vmem:[%s439_s5 + $0x8] sm:$0xff] }
  0x6a   : > { %v1234_v26 = vsel %vm1232_vm1, %v2500_v24, 0  ;;  %v1196_v30 = vld [vmem:[%s4273_s6] sm:$0xf]  ;;  %p773_p11 = scmp.eq.s32.totalorder %s4274_s28, 0  ;;  %vm3382_vm8 = vcmp.ne.s32.totalorder %v892_v60, 15  ;;  %v906_v28 = vand.u32 15, %v736_v23 }
  0x6b   : > { %1243 = vmatpush.bf16.msra.mxu1 %v1234_v26  ;;  %2590 = vmatpush.bf16.msra.mxu3 %v1234_v26  ;;  %v3349_v29 = vld [vmem:[%s4275_s1] ss:$0 sm:$0xff]  ;;  %v1310_v33 = vsel %vm1232_vm1, %v1196_v30, 0  ;;  %v735_v26 = vadd.s32 16, %v3370_v48  ;;  %v2553_v53 = vld [vmem:[%s4273_s6 + $0x18] sm:$0xf] }
  0x6c   : > { %2490 = vmatmul.msk.bf16.vlgmr.msra.gmra.mxu0 %vm534_vm0, %v516_v3  ;;  %v3357_v31 = vld [vmem:[%s4276_s21] ss:$0 sm:$0xff]  ;;  %2591 = vmatpush.bf16.msra.mxu2 %v1310_v33  ;;  %s774_s14 = scalar_select %p773_p11, 1, 0  ;;  %vm3422_vm13 = vcmp.ne.s32.totalorder %v906_v28, 15 }
  0x6d   : > { %1319 = vmatpush.bf16.msrb.mxu0 %v1310_v33  ;;  %v514_v44 = vld [vmem:[%s439_s5] sm:$0xff]  ;;  %p817_p0 = scmp.eq.s32.totalorder %s4274_s28, 1  ;;  %s4310_s5 = sld [smem:[#allocation33_spill]] }
  0x6e   : > { %v775_v39 = vstv %s774_s14  ;;  %v525_v49 = vpack.c.bf16 %v515_v45, %v514_v44  ;;  %s4309_s14 = sld [smem:[#allocation32_spill]]  ;;  %s2589_s27 = sshll.u32 %s4274_s28, 4 }
  0x6f   : > { %vm776_vm3 = vcmp.eq.s32.totalorder %v775_v39, 1  ;;  %s818_s20 = scalar_select %p817_p0, 1, 0 }
  0x70   : > { %s2583_s30 = sshll.u32 %s4311_s24, 5  ;;  %s2313_s1 = sshll.u32 %s4044_s23, 4  ;;  %s2314_s1 = int_to_ptr.vmem [resolvable:$true] %s2313_s1 }
  0x71   : > { %s2310_s17 = sadd.s32 %s2589_s27, %s2583_s30  ;;  %s2863_s19 = scalar_lea.hbm %s4312_s7, 512 }
  0x72   : > { %s2584_s28 = sshll.u32 %s2310_s17, 3 }
  0x73   : > { %s2312_s3 = scalar_lea.hbm %s4312_s7, %s2584_s28 }
  0x74   : > { %s2315_s0 = sshll.u32 %s2312_s3, 4  ;;  %s2316_s0 = int_to_ptr.hbm [resolvable:$true] %s2315_s0 }
  0x7c   : > { %2491 = vmatmul.msk.bf16.gmra.mxu0 %vm534_vm0, %v517_v6  ;;  %v1123_v6 = vrot.slane %v3001_v5, 7 }
  0x8c   : > { %2492 = vmatmul.msk.bf16.gmra.mxu0 %vm534_vm0, %v518_v9 }
  0x9c   : > { %2493 = vmatmul.msk.bf16.gmra.mxu0 %vm534_vm0, %v519_v12 }
  0xac   : > { %2494 = vmatmul.msk.bf16.gmra.mxu0 %vm534_vm0, %v520_v15 }
  0xbc   : > { %2495 = vmatmul.msk.bf16.gmra.mxu0 %vm534_vm0, %v521_v18 }
  0xcc   : > { %2496 = vmatmul.msk.bf16.gmra.mxu0 %vm534_vm0, %v522_v21 }
  0xdc   : > { %2497 = vmatmul.msk.bf16.gmra.mxu0 %vm534_vm0, %v523_v25 }
  0xe9   : > { %v574_v34 = vpop.f32.mrf.mxu0 }
  0xea   : > { %v628_v35 = vmul.f32 %v3349_v29, %v574_v34 }
  0xec   : > { %v652_v36 = vadd.f32 %v3357_v31, %v628_v35  ;;  %2498 = vmatmul.msk.bf16.gmra.mxu0 %vm534_vm0, %v524_v32  ;;  %v899_v35 = vand.u32 15, %v735_v26 }
  0xee   : > { %v692_v37 = vmul.f32 0.1, %v652_v36  ;;  %vm672_vm2 = vcmp.gt.f32.partialorder %v652_v36, 0.0  ;;  %vm3429_vm14 = vcmp.ne.s32.totalorder %v899_v35, 0 }
  0xf0   : > { %v712_v42 = vsel %vm672_vm2, %v652_v36, %v692_v37 }
  0xf1   : > { %v576_v38 = vpop.f32.mrf.mxu0  ;;  %v861_v47 = vsel %vm776_vm3, 0.0, %v712_v42 }
  0xf2   : > { %v629_v40 = vmul.f32 %v3349_v29, %v576_v38  ;;  %v1363_v56 = vrot.slane %v861_v47, 1  ;;  %v1124_v2 = vrot.slane %v861_v47, 7 }
  0xf4   : > { %v653_v43 = vadd.f32 %v3357_v31, %v629_v40  ;;  %v1125_v14 = vsel %vm1122_vm9, %v1123_v6, %v1124_v2 }
  0xf5   : > { %v1172_v20 = vsel %vm3396_vm11, %v1125_v14, 0.0 }
  0xf6   : > { %vm673_vm4 = vcmp.gt.f32.partialorder %v653_v43, 0.0  ;;  %v693_v46 = vmul.f32 0.1, %v653_v43 }
  0xf8   : > { %v713_v50 = vsel %vm673_vm4, %v653_v43, %v693_v46  ;;  %v2535_v46 = vld [vmem:[%s4273_s6 + $0x10] sm:$0xf] }
  0xf9   : > { %v579_v51 = vpop.f32.mrf.mxu0  ;;  %v3372_v52 = vsel %vm776_vm3, 0.0, %v713_v50 }
  0xfa   : > { %v630_v54 = vmul.f32 %v3349_v29, %v579_v51  ;;  %v1197_v55 = vpack.c.bf16 %v3372_v52, %v861_v47  ;;  %v1364_v57 = vrot.slane %v3372_v52, 1  ;;  %v1126_v7 = vrot.slane %v3372_v52, 7  ;;  %v2526_v52 = vld [vmem:[%s4273_s6 + $0xc] sm:$0xf] }
  0xfb   : > { %v1662_v51 = vsel %vm1232_vm1, %v2535_v46, 0 }
  0xfc   : > { %v654_v58 = vadd.f32 %v3357_v31, %v630_v54  ;;  %2499 = vmatmul.msk.bf16.gmra.mxu0 %vm534_vm0, %v525_v49  ;;  %2501 = vmatmul.msk.bf16.vlgmr.msra.gmra.mxu1 %vm1207_vm5, %v1197_v55  ;;  %v1365_v59 = vsel %vm1362_vm6, %v1363_v56, %v1364_v57  ;;  %v1127_v15 = vsel %vm1122_vm9, %v1124_v2, %v1126_v7  ;;  %v1588_v55 = vsel %vm1232_vm1, %v2526_v52, 0 }
  0xfd   : > { %v1188_v22 = vpack.c.bf16 %v1127_v15, %v1172_v20  ;;  %1671 = vmatpush.bf16.msrb.mxu2 %v1662_v51  ;;  %v1912_v56 = vsel %vm1232_vm1, %v2553_v53, 0  ;;  %1597 = vmatpush.bf16.msrb.mxu1 %v1588_v55  ;;  %v740_v51 = vadd.s32 56, %v3370_v48 }
  0xfe   : > { %vm674_vm7 = vcmp.gt.f32.partialorder %v654_v58, 0.0  ;;  %v694_v61 = vmul.f32 0.1, %v654_v58  ;;  %1921 = vmatpush.bf16.msra.mxu0 %v1912_v56 }
 0x100   : > { %v714_v62 = vsel %vm674_vm7, %v654_v58, %v694_v61 }
 0x101   : > { %v581_v63 = vpop.f32.mrf.mxu0  ;;  %v1366_v0 = vrot.slane %v714_v62, 1  ;;  %v1128_v32 = vrot.slane %v714_v62, 7 }
 0x102   : > { %v631_v3 = vmul.f32 %v3349_v29, %v581_v63  ;;  %v738_v63 = vadd.s32 40, %v3370_v48 }
 0x103   : > { %v1367_v8 = vsel %vm1362_vm6, %v1364_v57, %v1366_v0  ;;  %v3434_v42 = vsel %vm1122_vm9, %v1126_v7, %v1128_v32 }
 0x104   : > { %v655_v9 = vadd.f32 %v3357_v31, %v631_v3  ;;  %v1413_v10 = vsel %vm3382_vm8, %v1367_v8, 0.0  ;;  %v1174_v60 = vsel %vm3429_vm14, %v3434_v42, 0.0  ;;  %v737_v3 = vadd.s32 32, %v3370_v48 }
 0x105   : > { %v3394_v11 = vpack.c.bf16 %v1413_v10, %v1365_v59  ;;  %v920_v6 = vand.u32 15, %v738_v63  ;;  %v741_v63 = vadd.s32 64, %v3370_v48 }
 0x106   : > { %vm675_vm10 = vcmp.gt.f32.partialorder %v655_v9, 0.0  ;;  %v695_v12 = vmul.f32 0.1, %v655_v9  ;;  %v913_v8 = vand.u32 15, %v737_v3 }
 0x107   : > { %vm3477_vm3 = vcmp.ne.s32.totalorder %v920_v6, 15 }
 0x108   : > { %v3402_v16 = vsel %vm675_vm10, %v655_v9, %v695_v12  ;;  %v739_v9 = vadd.s32 48, %v3370_v48  ;;  %vm3483_vm4 = vcmp.ne.s32.totalorder %v913_v8, 0 }
 0x109   : > { %v584_v17 = vpop.f32.mrf.mxu0  ;;  %v3405_v18 = vpack.c.bf16 %v3402_v16, %v714_v62  ;;  %v1368_v19 = vrot.slane %v3402_v16, 1  ;;  %v1130_v38 = vrot.slane %v3402_v16, 7 }
 0x10a   : > { %v632_v21 = vmul.f32 %v3349_v29, %v584_v17  ;;  %v927_v23 = vand.u32 15, %v739_v9  ;;  %v941_v9 = vand.u32 15, %v741_v63 }
 0x10b   : > { %v1369_v24 = vsel %vm1362_vm6, %v1366_v0, %v1368_v19  ;;  %v3448_v50 = vsel %vm1122_vm9, %v1128_v32, %v1130_v38 }
 0x10c   : > { %v656_v25 = vadd.f32 %v3357_v31, %v632_v21  ;;  %2502 = vmatmul.msk.bf16.gmra.mxu1 %vm1207_vm5, %v3405_v18  ;;  %2509 = vmatmul.msk.bf16.vlgmr.msrb.gmra.mxu0 %vm1207_vm5, %v1188_v22  ;;  %v1189_v62 = vpack.c.bf16 %v3448_v50, %v1174_v60  ;;  %vm3505_vm10 = vcmp.ne.s32.totalorder %v927_v23, 0  ;;  %v934_v60 = vand.u32 15, %v740_v51 }
 0x10e   : > { %vm676_vm12 = vcmp.gt.f32.partialorder %v656_v25, 0.0  ;;  %v696_v27 = vmul.f32 0.1, %v656_v25 }
 0x110   : > { %v3418_v30 = vsel %vm676_vm12, %v656_v25, %v696_v27  ;;  %vm3539_vm12 = vcmp.ne.s32.totalorder %v934_v60, 15 }
 0x111   : > { %v586_v33 = vpop.f32.mrf.mxu0  ;;  %v1370_v34 = vrot.slane %v3418_v30, 1  ;;  %v1132_v10 = vrot.slane %v3418_v30, 7 }
 0x112   : > { %v633_v36 = vmul.f32 %v3349_v29, %v586_v33 }
 0x113   : > { %v1371_v39 = vsel %vm1362_vm6, %v1368_v19, %v1370_v34 }
 0x114   : > { %v657_v40 = vadd.f32 %v3357_v31, %v633_v36  ;;  %v1415_v43 = vsel %vm3422_vm13, %v1371_v39, 0.0  ;;  %v1737_v44 = vsel %vm3382_vm8, %v1371_v39, 0.0 }
 0x115   : > { %v3443_v47 = vpack.c.bf16 %v1415_v43, %v1369_v24  ;;  %v3445_v49 = vpack.c.bf16 %v1737_v44, %v1369_v24  ;;  %v3488_v24 = vsel %vm1122_vm9, %v1130_v38, %v1132_v10 }
 0x116   : > { %vm677_vm15 = vcmp.gt.f32.partialorder %v657_v40, 0.0  ;;  %v697_v45 = vmul.f32 0.1, %v657_v40  ;;  %v1176_v44 = vsel %vm3483_vm4, %v3488_v24, 0.0  ;;  %v1861_v37 = vsel %vm3396_vm11, %v3488_v24, 0.0 }
 0x118   : > { %v717_v54 = vsel %vm677_vm15, %v657_v40, %v697_v45 }
 0x119   : > { %v589_v57 = vpop.f32.mrf.mxu0  ;;  %v3460_v58 = vpack.c.bf16 %v717_v54, %v3418_v30  ;;  %v1372_v59 = vrot.slane %v717_v54, 1  ;;  %v1134_v17 = vrot.slane %v717_v54, 7 }
 0x11a   : > { %v634_v61 = vmul.f32 %v3349_v29, %v589_v57 }
 0x11b   : > { %v1373_v0 = vsel %vm1362_vm6, %v1370_v34, %v1372_v59  ;;  %v3501_v33 = vsel %vm1122_vm9, %v1132_v10, %v1134_v17 }
 0x11c   : > { %v658_v2 = vadd.f32 %v3357_v31, %v634_v61  ;;  %2503 = vmatmul.msk.bf16.gmra.mxu1 %vm1207_vm5, %v3460_v58  ;;  %2510 = vmatmul.msk.bf16.gmra.mxu0 %vm1207_vm5, %v1189_v62  ;;  %v1190_v46 = vpack.c.bf16 %v3501_v33, %v1176_v44  ;;  %v742_v44 = vadd.s32 72, %v3370_v48 }
 0x11e   : > { %vm678_vm2 = vcmp.gt.f32.partialorder %v658_v2, 0.0  ;;  %v698_v4 = vmul.f32 0.1, %v658_v2 }
 0x120   : > { %v718_v7 = vsel %vm678_vm2, %v658_v2, %v698_v4  ;;  %vm3555_vm2 = vcmp.ne.s32.totalorder %v941_v9, 0 }
 0x121   : > { %v591_v12 = vpop.f32.mrf.mxu0  ;;  %v1374_v14 = vrot.slane %v718_v7, 1  ;;  %v1136_v21 = vrot.slane %v718_v7, 7 }
 0x122   : > { %v635_v15 = vmul.f32 %v3349_v29, %v591_v12 }
 0x123   : > { %v1375_v19 = vsel %vm1362_vm6, %v1372_v59, %v1374_v14  ;;  %v3510_v1 = vsel %vm1122_vm9, %v1134_v17, %v1136_v21  ;;  %v2517_v59 = vld [vmem:[%s4273_s6 + $0x8] sm:$0xf] }
 0x124   : > { %v659_v20 = vadd.f32 %v3357_v31, %v635_v15  ;;  %v1417_v25 = vsel %vm3477_vm3, %v1375_v19, 0.0  ;;  %v2060_v26 = vsel %vm3382_vm8, %v1375_v19, 0.0  ;;  %v1739_v27 = vsel %vm3422_vm13, %v1375_v19, 0.0 }
 0x125   : > { %v3496_v30 = vpack.c.bf16 %v1417_v25, %v1373_v0  ;;  %v3498_v32 = vpack.c.bf16 %v2060_v26, %v1373_v0  ;;  %v3503_v34 = vpack.c.bf16 %v1739_v27, %v1373_v0  ;;  %v1178_v53 = vsel %vm3505_vm10, %v3510_v1, 0.0 }
 0x126   : > { %vm679_vm7 = vcmp.gt.f32.partialorder %v659_v20, 0.0  ;;  %v699_v28 = vmul.f32 0.1, %v659_v20  ;;  %v1463_v61 = vsel %vm1232_vm1, %v2517_v59, 0  ;;  %v1863_v13 = vsel %vm3429_vm14, %v3510_v1, 0.0 }
 0x127   : > { %1472 = vmatpush.bf16.msrb.mxu3 %v1463_v61 }
 0x128   : > { %v719_v35 = vsel %vm679_vm7, %v659_v20, %v699_v28 }
 0x129   : > { %v594_v38 = vpop.f32.mrf.mxu0  ;;  %v1138_v39 = vrot.slane %v719_v35, 7  ;;  %v3512_v40 = vpack.c.bf16 %v719_v35, %v718_v7  ;;  %v1376_v43 = vrot.slane %v719_v35, 1 }
 0x12a   : > { %v636_v45 = vmul.f32 %v3349_v29, %v594_v38  ;;  %v1877_v38 = vpack.c.bf16 %v3501_v33, %v1861_v37 }
 0x12b   : > { %v3521_v52 = vsel %vm1122_vm9, %v1136_v21, %v1138_v39  ;;  %v1377_v54 = vsel %vm1362_vm6, %v1374_v14, %v1376_v43 }
 0x12c   : > { %v660_v55 = vadd.f32 %v3357_v31, %v636_v45  ;;  %2504 = vmatmul.msk.bf16.gmra.mxu1 %vm1207_vm5, %v3512_v40  ;;  %2511 = vmatmul.msk.bf16.gmra.mxu0 %vm1207_vm5, %v1190_v46  ;;  %v1191_v56 = vpack.c.bf16 %v3521_v52, %v1178_v53 }
 0x12e   : > { %vm680_vm8 = vcmp.gt.f32.partialorder %v660_v55, 0.0  ;;  %v700_v57 = vmul.f32 0.1, %v660_v55  ;;  %2512 = vmatmul.msk.bf16.vlgmr.msra.gmra.mxu2 %vm1207_vm5, %v1191_v56 }
 0x130   : > { %v720_v62 = vsel %vm680_vm8, %v660_v55, %v700_v57  ;;  %v948_v55 = vand.u32 15, %v742_v44  ;;  %v743_v57 = vadd.s32 80, %v3370_v48 }
 0x131   : > { %v596_v0 = vpop.f32.mrf.mxu0  ;;  %v1378_v2 = vrot.slane %v720_v62, 1  ;;  %v1140_v8 = vrot.slane %v720_v62, 7 }
 0x132   : > { %v637_v3 = vmul.f32 %v3349_v29, %v596_v0  ;;  %vm3587_vm7 = vcmp.ne.s32.totalorder %v948_v55, 15 }
 0x133   : > { %v1379_v6 = vsel %vm1362_vm6, %v1376_v43, %v1378_v2  ;;  %v3560_v23 = vsel %vm1122_vm9, %v1138_v39, %v1140_v8 }
 0x134   : > { %v661_v7 = vadd.f32 %v3357_v31, %v637_v3  ;;  %v1419_v10 = vsel %vm3539_vm12, %v1379_v6, 0.0  ;;  %v2062_v12 = vsel %vm3422_vm13, %v1379_v6, 0.0  ;;  %v1741_v19 = vsel %vm3477_vm3, %v1379_v6, 0.0 }
 0x135   : > { %v3549_v15 = vpack.c.bf16 %v1419_v10, %v1377_v54  ;;  %v3551_v17 = vpack.c.bf16 %v2062_v12, %v1377_v54  ;;  %v3562_v25 = vpack.c.bf16 %v1741_v19, %v1377_v54  ;;  %v1180_v45 = vsel %vm3555_vm2, %v3560_v23, 0.0 }
 0x136   : > { %vm681_vm15 = vcmp.gt.f32.partialorder %v661_v7, 0.0  ;;  %v701_v14 = vmul.f32 0.1, %v661_v7  ;;  %v955_v3 = vand.u32 15, %v743_v57  ;;  %v1537_v12 = vsel %vm3396_vm11, %v3434_v42, 0.0 }
 0x137   : > { %v1553_v42 = vpack.c.bf16 %v3448_v50, %v1537_v12 }
 0x138   : > { %v721_v20 = vsel %vm681_vm15, %v661_v7, %v701_v14  ;;  %vm3606_vm15 = vcmp.ne.s32.totalorder %v955_v3, 0 }
 0x139   : > { %v599_v26 = vpop.f32.mrf.mxu0  ;;  %v1142_v27 = vrot.slane %v721_v20, 7  ;;  %v3567_v28 = vpack.c.bf16 %v721_v20, %v720_v62  ;;  %v1380_v35 = vrot.slane %v721_v20, 1 }
 0x13a   : > { %v638_v43 = vmul.f32 %v3349_v29, %v599_v26 }
 0x13b   : > { %v3573_v39 = vsel %vm1122_vm9, %v1140_v8, %v1142_v27  ;;  %v1381_v46 = vsel %vm1362_vm6, %v1378_v2, %v1380_v35 }
 0x13c   : > { %v662_v51 = vadd.f32 %v3357_v31, %v638_v43  ;;  %2505 = vmatmul.msk.bf16.gmra.mxu1 %vm1207_vm5, %v3567_v28  ;;  %2554 = vmatmul.msk.bf16.vlgmr.msra.gmra.mxu0 %vm1207_vm5, %v1877_v38  ;;  %v1192_v53 = vpack.c.bf16 %v3573_v39, %v1180_v45  ;;  %v1878_v45 = vpack.c.bf16 %v3521_v52, %v1863_v13 }
 0x13e   : > { %vm682_vm13 = vcmp.gt.f32.partialorder %v662_v51, 0.0  ;;  %v702_v54 = vmul.f32 0.1, %v662_v51  ;;  %2513 = vmatmul.msk.bf16.gmra.mxu2 %vm1207_vm5, %v1192_v53 }
 0x140   : > { %v722_v56 = vsel %vm682_vm13, %v662_v51, %v702_v54 }
 0x141   : > { %v601_v59 = vpop.f32.mrf.mxu0  ;;  %v1382_v60 = vrot.slane %v722_v56, 1  ;;  %v1144_v2 = vrot.slane %v722_v56, 7 }
 0x142   : > { %v639_v61 = vmul.f32 %v3349_v29, %v601_v59  ;;  %v745_v59 = vadd.s32 96, %v3370_v48 }
 0x143   : > { %v1383_v63 = vsel %vm1362_vm6, %v1380_v35, %v1382_v60  ;;  %v3611_v16 = vsel %vm1122_vm9, %v1142_v27, %v1144_v2  ;;  %v744_v27 = vadd.s32 88, %v3370_v48 }
 0x144   : > { %v663_v0 = vadd.f32 %v3357_v31, %v639_v61  ;;  %v1421_v6 = vsel %vm3587_vm7, %v1383_v63, 0.0  ;;  %v2064_v7 = vsel %vm3477_vm3, %v1383_v63, 0.0  ;;  %v1743_v14 = vsel %vm3539_vm12, %v1383_v63, 0.0 }
 0x145   : > { %v3597_v9 = vpack.c.bf16 %v1421_v6, %v1381_v46  ;;  %v3599_v10 = vpack.c.bf16 %v2064_v7, %v1381_v46  ;;  %v3613_v37 = vpack.c.bf16 %v1743_v14, %v1381_v46  ;;  %v1182_v51 = vsel %vm3606_vm15, %v3611_v16, 0.0 }
 0x146   : > { %vm683_vm8 = vcmp.gt.f32.partialorder %v663_v0, 0.0  ;;  %v703_v8 = vmul.f32 0.1, %v663_v0  ;;  %v969_v7 = vand.u32 15, %v745_v59 }
 0x148   : > { %v723_v19 = vsel %vm683_vm8, %v663_v0, %v703_v8  ;;  %vm3661_vm8 = vcmp.ne.s32.totalorder %v969_v7, 0 }
 0x149   : > { %v604_v26 = vpop.f32.mrf.mxu0  ;;  %v1146_v35 = vrot.slane %v723_v19, 7  ;;  %v3615_v38 = vpack.c.bf16 %v723_v19, %v722_v56  ;;  %v1384_v43 = vrot.slane %v723_v19, 1  ;;  %v962_v56 = vand.u32 15, %v744_v27 }
 0x14a   : > { %v640_v44 = vmul.f32 %v3349_v29, %v604_v26 }
 0x14b   : > { %2506 = vmatmul.msk.bf16.vlgmr.msra.gmra.mxu3 %vm1207_vm5, %v3615_v38  ;;  %v3627_v46 = vsel %vm1122_vm9, %v1144_v2, %v1146_v35  ;;  %v1385_v53 = vsel %vm1362_vm6, %v1382_v60, %v1384_v43  ;;  %vm3640_vm3 = vcmp.ne.s32.totalorder %v962_v56, 15  ;;  %v746_v56 = vadd.s32 104, %v3370_v48 }
 0x14c   : > { %v664_v50 = vadd.f32 %v3357_v31, %v640_v44  ;;  %2527 = vmatmul.msk.bf16.vlgmr.msrb.gmra.mxu1 %vm1207_vm5, %v1553_v42  ;;  %2555 = vmatmul.msk.bf16.gmra.mxu0 %vm1207_vm5, %v1878_v45  ;;  %v1193_v54 = vpack.c.bf16 %v3627_v46, %v1182_v51  ;;  %v1539_v44 = vsel %vm3429_vm14, %v3488_v24, 0.0 }
 0x14d   : > { %v1554_v41 = vpack.c.bf16 %v3501_v33, %v1539_v44 }
 0x14e   : > { %vm684_vm11 = vcmp.gt.f32.partialorder %v664_v50, 0.0  ;;  %v704_v55 = vmul.f32 0.1, %v664_v50  ;;  %2514 = vmatmul.msk.bf16.gmra.mxu2 %vm1207_vm5, %v1193_v54 }
 0x150   : > { %v724_v57 = vsel %vm684_vm11, %v664_v50, %v704_v55 }
 0x151   : > { %v606_v61 = vpop.f32.mrf.mxu0  ;;  %v1386_v63 = vrot.slane %v724_v57, 1  ;;  %v1148_v6 = vrot.slane %v724_v57, 7 }
 0x152   : > { %v641_v60 = vmul.f32 %v3349_v29, %v606_v61 }
 0x153   : > { %v1387_v2 = vsel %vm1362_vm6, %v1384_v43, %v1386_v63  ;;  %v3666_v4 = vsel %vm1122_vm9, %v1146_v35, %v1148_v6 }
 0x154   : > { %v665_v3 = vadd.f32 %v3357_v31, %v641_v60  ;;  %v1423_v8 = vsel %vm3640_vm3, %v1387_v2, 0.0  ;;  %v2066_v12 = vsel %vm3539_vm12, %v1387_v2, 0.0  ;;  %v1745_v14 = vsel %vm3587_vm7, %v1387_v2, 0.0 }
 0x155   : > { %v3652_v26 = vpack.c.bf16 %v1423_v8, %v1385_v53  ;;  %v3654_v13 = vpack.c.bf16 %v2066_v12, %v1385_v53  ;;  %v3656_v43 = vpack.c.bf16 %v1745_v14, %v1385_v53  ;;  %v1865_v53 = vsel %vm3483_vm4, %v3560_v23, 0.0  ;;  %v2544_v12 = vld [vmem:[%s4273_s6 + $0x14] sm:$0xf] }
 0x156   : > { %vm685_vm13 = vcmp.gt.f32.partialorder %v665_v3, 0.0  ;;  %v705_v19 = vmul.f32 0.1, %v665_v3  ;;  %v1879_v24 = vpack.c.bf16 %v3573_v39, %v1865_v53  ;;  %v976_v2 = vand.u32 15, %v746_v56 }
 0x157   : > { %v1787_v44 = vsel %vm1232_vm1, %v2544_v12, 0  ;;  %v2055_v14 = vrot.slane %v3001_v5, 1 }
 0x158   : > { %v725_v42 = vsel %vm685_vm13, %v665_v3, %v705_v19  ;;  %v747_v3 = vadd.s32 112, %v3370_v48  ;;  %vm3696_vm12 = vcmp.ne.s32.totalorder %v976_v2, 15  ;;  %1796 = vmatpush.bf16.msra.mxu3 %v1787_v44  ;;  %v1541_v2 = vsel %vm3483_vm4, %v3510_v1, 0.0 }
 0x159   : > { %v609_v27 = vpop.f32.mrf.mxu0  ;;  %v1150_v51 = vrot.slane %v725_v42, 7  ;;  %v3668_v50 = vpack.c.bf16 %v725_v42, %v724_v57  ;;  %v1388_v54 = vrot.slane %v725_v42, 1  ;;  %v1184_v57 = vsel %vm3661_vm8, %v3666_v4, 0.0 }
 0x15a   : > { %v642_v55 = vmul.f32 %v3349_v29, %v609_v27  ;;  %v983_v42 = vand.u32 15, %v747_v3  ;;  %v1867_v3 = vsel %vm3505_vm10, %v3611_v16, 0.0  ;;  %v1555_v44 = vpack.c.bf16 %v3521_v52, %v1541_v2 }
 0x15b   : > { %2507 = vmatmul.msk.bf16.gmra.mxu3 %vm1207_vm5, %v3668_v50  ;;  %v3680_v35 = vsel %vm1122_vm9, %v1148_v6, %v1150_v51  ;;  %v1389_v59 = vsel %vm1362_vm6, %v1386_v63, %v1388_v54  ;;  %v1880_v22 = vpack.c.bf16 %v3627_v46, %v1867_v3 }
 0x15c   : > { %v666_v61 = vadd.f32 %v3357_v31, %v642_v55  ;;  %2528 = vmatmul.msk.bf16.gmra.mxu1 %vm1207_vm5, %v1554_v41  ;;  %2556 = vmatmul.msk.bf16.gmra.mxu0 %vm1207_vm5, %v1879_v24  ;;  %v1194_v33 = vpack.c.bf16 %v3680_v35, %v1184_v57  ;;  %vm3713_vm13 = vcmp.ne.s32.totalorder %v983_v42, 0 }
 0x15e   : > { %vm686_vm14 = vcmp.gt.f32.partialorder %v666_v61, 0.0  ;;  %v706_v60 = vmul.f32 0.1, %v666_v61  ;;  %2515 = vmatmul.msk.bf16.gmra.mxu2 %vm1207_vm5, %v1194_v33 }
 0x160   : > { %v726_v6 = vsel %vm686_vm14, %v666_v61, %v706_v60 }
 0x161   : > { %v611_v7 = vpop.f32.mrf.mxu0  ;;  %v1390_v8 = vrot.slane %v726_v6, 1  ;;  %v1152_v19 = vrot.slane %v726_v6, 7 }
 0x162   : > { %v643_v63 = vmul.f32 %v3349_v29, %v611_v7 }
 0x163   : > { %v1391_v27 = vsel %vm1362_vm6, %v1388_v54, %v1390_v8  ;;  %v3718_v33 = vsel %vm1122_vm9, %v1150_v51, %v1152_v19 }
 0x164   : > { %v667_v53 = vadd.f32 %v3357_v31, %v643_v63  ;;  %v1425_v55 = vsel %vm3696_vm12, %v1391_v27, 0.0  ;;  %v2068_v41 = vsel %vm3587_vm7, %v1391_v27, 0.0  ;;  %v1747_v24 = vsel %vm3640_vm3, %v1391_v27, 0.0  ;;  %v2571_v27 = vld [vmem:[%s4273_s6 + $0x20] sm:$0xf] }
 0x165   : > { %v3709_v57 = vpack.c.bf16 %v1425_v55, %v1389_v59  ;;  %v3711_v61 = vpack.c.bf16 %v2068_v41, %v1389_v59  ;;  %v3720_v60 = vpack.c.bf16 %v1747_v24, %v1389_v59  ;;  %v748_v59 = vadd.s32 120, %v3370_v48 }
 0x166   : > { %vm687_vm11 = vcmp.gt.f32.partialorder %v667_v53, 0.0  ;;  %v707_v56 = vmul.f32 0.1, %v667_v53  ;;  %v1186_v1 = vsel %vm3713_vm13, %v3718_v33, 0.0  ;;  %v2110_v52 = vsel %vm1232_vm1, %v2571_v27, 0 }
 0x167   : > { %2119 = vmatpush.bf16.msra.mxu2 %v2110_v52  ;;  %v1869_v52 = vsel %vm3555_vm2, %v3666_v4, 0.0 }
 0x168   : > { %v3722_v62 = vsel %vm687_vm11, %v667_v53, %v707_v56  ;;  %v990_v56 = vand.u32 15, %v748_v59 }
 0x169   : > { %v614_v7 = vpop.f32.mrf.mxu0  ;;  %v1154_v63 = vrot.slane %v3722_v62, 7  ;;  %v3732_v12 = vpack.c.bf16 %v3722_v62, %v726_v6  ;;  %v1392_v51 = vrot.slane %v3722_v62, 1  ;;  %v2562_v6 = vld [vmem:[%s4273_s6 + $0x1c] sm:$0xf] }
 0x16a   : > { %v644_v42 = vmul.f32 %v3349_v29, %v614_v7  ;;  %v1986_v53 = vsel %vm1232_vm1, %v2562_v6, 0  ;;  %vm3766_vm1 = vcmp.ne.s32.totalorder %v990_v56, 15 }
 0x16b   : > { %2508 = vmatmul.msk.bf16.gmra.mxu3 %vm1207_vm5, %v3732_v12  ;;  %v3753_v48 = vsel %vm1122_vm9, %v1152_v19, %v1154_v63  ;;  %v1393_v55 = vsel %vm1362_vm6, %v1390_v8, %v1392_v51  ;;  %1995 = vmatpush.bf16.msra.mxu1 %v1986_v53  ;;  %v1881_v53 = vpack.c.bf16 %v3680_v35, %v1869_v52 }
 0x16c   : > { %v668_v41 = vadd.f32 %v3357_v31, %v644_v42  ;;  %2529 = vmatmul.msk.bf16.gmra.mxu1 %vm1207_vm5, %v1555_v44  ;;  %2557 = vmatmul.msk.bf16.gmra.mxu0 %vm1207_vm5, %v1880_v22  ;;  %v1195_v24 = vpack.c.bf16 %v3753_v48, %v1186_v1 }
 0x16e   : > { %vm688_vm4 = vcmp.gt.f32.partialorder %v668_v41, 0.0  ;;  %v708_v19 = vmul.f32 0.1, %v668_v41  ;;  %2516 = vmatmul.msk.bf16.gmra.mxu2 %vm1207_vm5, %v1195_v24  ;;  %v1871_v24 = vsel %vm3606_vm15, %v3718_v33, 0.0 }
 0x170   : > { %v3763_v2 = vsel %vm688_vm4, %v668_v41, %v708_v19 }
 0x171   : > { %v1394_v3 = vrot.slane %v3763_v2, 1  ;;  %v616_v36 = vpop.f32.mrf.mxu0 }
 0x173   : > { %v1395_v7 = vsel %vm1362_vm6, %v1392_v51, %v1394_v3  ;;  %v1543_v51 = vsel %vm3505_vm10, %v3560_v23, 0.0 }
 0x174   : > { %v1427_v42 = vsel %vm3766_vm1, %v1395_v7, 0.0  ;;  %v2070_v44 = vsel %vm3640_vm3, %v1395_v7, 0.0  ;;  %v1749_v22 = vsel %vm3696_vm12, %v1395_v7, 0.0  ;;  %v1556_v0 = vpack.c.bf16 %v3573_v39, %v1543_v51 }
 0x175   : > { %v3775_v59 = vpack.c.bf16 %v1427_v42, %v1393_v55  ;;  %v3781_v1 = vpack.c.bf16 %v2070_v44, %v1393_v55  ;;  %v3783_v27 = vpack.c.bf16 %v1749_v22, %v1393_v55  ;;  %v645_v55 = vmul.f32 %v3349_v29, %v616_v36 }
 0x176   : > { %v1547_v22 = vsel %vm3606_vm15, %v3666_v4, 0.0 }
 0x177   : > { %v669_v41 = vadd.f32 %v3357_v31, %v645_v55  ;;  %v1558_v52 = vpack.c.bf16 %v3680_v35, %v1547_v22 }
 0x179   : > { %v3785_v6 = vpop.f32.mrf.mxu1  ;;  %v709_v19 = vmul.f32 0.1, %v669_v41  ;;  %vm689_vm10 = vcmp.gt.f32.partialorder %v669_v41, 0.0  ;;  %v619_v62 = vpop.f32.mrf.mxu0 }
 0x17a   : > { %v646_v20 = vmul.f32 %v3349_v29, %v619_v62 }
 0x17b   : > { %2518 = vmatmul.msk.bf16.vlgmr.msrb.gmra.mxu3 %vm1207_vm5, %v3394_v11  ;;  %v1545_v11 = vsel %vm3555_vm2, %v3611_v16, 0.0  ;;  %v3821_v21 = vsel %vm689_vm10, %v669_v41, %v709_v19 }
 0x17c   : > { %2530 = vmatmul.msk.bf16.gmra.mxu1 %vm1207_vm5, %v1556_v0  ;;  %2558 = vmatmul.msk.bf16.gmra.mxu0 %vm1207_vm5, %v1881_v53  ;;  %v1557_v56 = vpack.c.bf16 %v3627_v46, %v1545_v11  ;;  %v1531_v46 = vrot.slane %v3763_v2, 7  ;;  %v1533_v7 = vrot.slane %v3821_v21, 7  ;;  %v670_v55 = vadd.f32 %v3357_v31, %v646_v20 }
 0x17d   : > { %v819_v11 = vstv %s818_s20  ;;  %s2857_s20 = sshra.s32 %s2316_s0, 4  ;;  %s2858_s20 = int_to_ptr.hbm [resolvable:$true] %s2857_s20 }
 0x17e   : > { %2536 = vmatmul.msk.bf16.vlgmr.msrb.gmra.mxu2 %vm1207_vm5, %v3405_v18  ;;  %v1882_v18 = vpack.c.bf16 %v3753_v48, %v1871_v24  ;;  %v1534_v42 = vsel %vm1122_vm9, %v1531_v46, %v1533_v7  ;;  %vm690_vm2 = vcmp.gt.f32.partialorder %v670_v55, 0.0  ;;  %vm820_vm15 = vcmp.eq.s32.totalorder %v819_v11, 1  ;;  %s2859_s4 = scalar_lea.hbm %s2858_s20, 128  ;;  %p2864_p8 = scmp.lt.s32.totalorder %s2858_s20, %s4312_s7 }
 0x17f   : > { %p2860_p7 = scmp.ne.s32.totalorder %s2858_s20, %s2859_s4  ;;  %p2865_p9 = scmp.lt.s32.totalorder %s2863_s19, %s2859_s4 }
 0x181   : > { %v3801_v23 = vpop.f32.mrf.mxu1  ;;  %v621_v4 = vpop.f32.mrf.mxu0  ;;  %p2861_p3 = pnand %p2860_p7, %p3225_p4  ;;  %p2866_p10 = por %p2865_p9, %p2864_p8 }
 0x182   : > { %v647_v35 = vmul.f32 %v3349_v29, %v621_v4  ;;  %v710_v29 = vmul.f32 0.1, %v670_v55 }
 0x183   : > { %p2862_p5 = pneg %p2861_p3 }
 0x184   : > { %v671_v41 = vadd.f32 %v3357_v31, %v647_v35 }
 0x185   : > { %p2867_p12 = pnand %p2866_p10, %p2862_p5 }
 0x186   : > { %v711_v45 = vmul.f32 0.1, %v671_v41  ;;  %vm691_vm7 = vcmp.gt.f32.partialorder %v671_v41, 0.0 }
 0x189   : > { %v3805_v39 = vpop.f32.mrf.mxu1 }
 0x18b   : > { %2519 = vmatmul.msk.bf16.gmra.mxu3 %vm1207_vm5, %v3443_v47  ;;  %v1532_v47 = vsel %vm1122_vm9, %v1154_v63, %v1531_v46 }
 0x18c   : > { %2531 = vmatmul.msk.bf16.gmra.mxu1 %vm1207_vm5, %v1557_v56  ;;  %2559 = vmatmul.msk.bf16.gmra.mxu0 %vm1207_vm5, %v1882_v18  ;;  %v1873_v51 = vsel %vm3661_vm8, %v1532_v47, 0.0  ;;  %v731_v56 = vsel %vm691_vm7, %v671_v41, %v711_v45  ;;  %v1551_v46 = vsel %vm3713_vm13, %v1532_v47, 0.0 }
 0x18d   : > { %v1883_v0 = vpack.c.bf16 %v1534_v42, %v1873_v51  ;;  %v3865_v19 = vsel %vm820_vm15, 0.0, %v731_v56 }
 0x18e   : > { %2537 = vmatmul.msk.bf16.gmra.mxu2 %vm1207_vm5, %v3460_v58 }
 0x191   : > { %v3823_v16 = vpop.f32.mrf.mxu1 }
 0x199   : > { %v3831_v44 = vpop.f32.mrf.mxu1 }
 0x19b   : > { %2520 = vmatmul.msk.bf16.gmra.mxu3 %vm1207_vm5, %v3496_v30  ;;  %v1549_v30 = vsel %vm3661_vm8, %v3718_v33, 0.0 }
 0x19c   : > { %2532 = vmatmul.msk.bf16.gmra.mxu1 %vm1207_vm5, %v1558_v52  ;;  %2560 = vmatmul.msk.bf16.gmra.mxu0 %vm1207_vm5, %v1883_v0  ;;  %v1559_v36 = vpack.c.bf16 %v3753_v48, %v1549_v30  ;;  %v1560_v52 = vpack.c.bf16 %v1534_v42, %v1551_v46  ;;  %v1857_v0 = vrot.slane %v3865_v19, 7 }
 0x19e   : > { %2538 = vmatmul.msk.bf16.gmra.mxu2 %vm1207_vm5, %v3512_v40 }
 0x1a1   : > { %v3845_v63 = vpop.f32.mrf.mxu1 }
 0x1a9   : > { %v1260_v53 = vpop.f32.mrf.mxu1 }
 0x1ab   : > { %2521 = vmatmul.msk.bf16.gmra.mxu3 %vm1207_vm5, %v3549_v15  ;;  %v730_v15 = vsel %vm690_vm2, %v670_v55, %v710_v29 }
 0x1ac   : > { %2533 = vmatmul.msk.bf16.gmra.mxu1 %vm1207_vm5, %v1559_v36  ;;  %v3863_v18 = vsel %vm820_vm15, 0.0, %v730_v15 }
 0x1ad   : > { %v1855_v22 = vrot.slane %v3863_v18, 7 }
 0x1ae   : > { %2539 = vmatmul.msk.bf16.gmra.mxu2 %vm1207_vm5, %v3567_v28 }
 0x1af   : > { %v1856_v20 = vsel %vm1122_vm9, %v1533_v7, %v1855_v22  ;;  %v1858_v47 = vsel %vm1122_vm9, %v1855_v22, %v1857_v0 }
 0x1b0   : > { %v1875_v4 = vsel %vm3713_vm13, %v1856_v20, 0.0 }
 0x1b1   : > { %v1262_v33 = vpop.f32.mrf.mxu1  ;;  %v1336_v48 = vpop.f32.mrf.mxu2  ;;  %v1884_v42 = vpack.c.bf16 %v1858_v47, %v1875_v4 }
 0x1b2   : > { %v3861_v24 = vadd.f32 %v1336_v48, %v1260_v53 }
 0x1b3   : > { %2561 = vmatmul.msk.bf16.gmra.mxu0 %vm1207_vm5, %v1884_v42 }
 0x1b9   : > { %v1265_v31 = vpop.f32.mrf.mxu1  ;;  %v1338_v51 = vpop.f32.mrf.mxu2 }
 0x1ba   : > { %v3871_v62 = vadd.f32 %v1338_v51, %v1262_v33 }
 0x1bb   : > { %2522 = vmatmul.msk.bf16.gmra.mxu3 %vm1207_vm5, %v3597_v9 }
 0x1bc   : > { %2534 = vmatmul.msk.bf16.gmra.mxu1 %vm1207_vm5, %v1560_v52  ;;  %v1321_v52 = vpop.f32.mrf.mxu0 }
 0x1be   : > { %2540 = vmatmul.msk.bf16.gmra.mxu2 %vm1207_vm5, %v3615_v38 }
 0x1c1   : > { %v1267_v35 = vpop.f32.mrf.mxu1  ;;  %v1341_v53 = vpop.f32.mrf.mxu2 }
 0x1c2   : > { %v3883_v30 = vadd.f32 %v1341_v53, %v1265_v31 }
 0x1c4   : > { %v1323_v42 = vpop.f32.mrf.mxu0 }
 0x1c9   : > { %v1599_v9 = vpop.f32.mrf.mxu1  ;;  %v1343_v36 = vpop.f32.mrf.mxu2 }
 0x1ca   : > { %v3885_v55 = vadd.f32 %v1343_v36, %v1267_v35 }
 0x1cb   : > { %2523 = vmatmul.msk.bf16.gmra.mxu3 %vm1207_vm5, %v3652_v26 }
 0x1cc   : > { %2563 = vmatmul.msk.bf16.vlgmr.msra.gmra.mxu1 %vm1207_vm5, %v3460_v58 }
 0x1ce   : > { %v1270_v7 = vpop.f32.mrf.mxu3  ;;  %2541 = vmatmul.msk.bf16.gmra.mxu2 %vm1207_vm5, %v3668_v50 }
 0x1d1   : > { %v1601_v54 = vpop.f32.mrf.mxu1  ;;  %v1346_v41 = vpop.f32.mrf.mxu2 }
 0x1d2   : > { %v3893_v29 = vadd.f32 %v1346_v41, %v1270_v7 }
 0x1d6   : > { %v1272_v11 = vpop.f32.mrf.mxu3 }
 0x1d9   : > { %v1348_v45 = vpop.f32.mrf.mxu2  ;;  %v1604_v33 = vpop.f32.mrf.mxu1 }
 0x1da   : > { %v3895_v48 = vadd.f32 %v1348_v45, %v1272_v11 }
 0x1db   : > { %2524 = vmatmul.msk.bf16.gmra.mxu3 %vm1207_vm5, %v3709_v57 }
 0x1dc   : > { %2564 = vmatmul.msk.bf16.gmra.mxu1 %vm1207_vm5, %v3512_v40  ;;  %v3913_v40 = vpack.c.bf16 %v3821_v21, %v3763_v2  ;;  %v2053_v2 = vrot.slane %v3865_v19, 1 }
 0x1de   : > { %v1275_v58 = vpop.f32.mrf.mxu3  ;;  %2542 = vmatmul.msk.bf16.gmra.mxu2 %vm1207_vm5, %v3732_v12 }
 0x1e1   : > { %v1351_v26 = vpop.f32.mrf.mxu2  ;;  %v1606_v56 = vpop.f32.mrf.mxu1 }
 0x1e2   : > { %v3903_v15 = vadd.f32 %v1351_v26, %v1275_v58  ;;  %v1326_v58 = vpop.f32.mrf.mxu0  ;;  %v1324_v26 = vadd.f32 %v1323_v42, %v3801_v23 }
 0x1e6   : > { %v1277_v31 = vpop.f32.mrf.mxu3 }
 0x1e9   : > { %v1353_v46 = vpop.f32.mrf.mxu2  ;;  %v1609_v57 = vpop.f32.mrf.mxu1 }
 0x1ea   : > { %v3905_v22 = vadd.f32 %v1353_v46, %v1277_v31 }
 0x1eb   : > { %2525 = vmatmul.msk.bf16.gmra.mxu3 %vm1207_vm5, %v3775_v59 }
 0x1ec   : > { %2565 = vmatmul.msk.bf16.gmra.mxu1 %vm1207_vm5, %v3567_v28  ;;  %v1322_v28 = vadd.f32 %v1321_v52, %v3785_v6 }
 0x1ee   : > { %v1280_v51 = vpop.f32.mrf.mxu3  ;;  %2543 = vmatmul.msk.bf16.gmra.mxu2 %vm1207_vm5, %v3913_v40 }
 0x1f1   : > { %v1356_v0 = vpop.f32.mrf.mxu2  ;;  %v1611_v4 = vpop.f32.mrf.mxu1 }
 0x1f2   : > { %v3917_v20 = vadd.f32 %v1356_v0, %v1280_v51 }
 0x1f6   : > { %v1282_v47 = vpop.f32.mrf.mxu3 }
 0x1f9   : > { %v1358_v59 = vpop.f32.mrf.mxu2  ;;  %v1614_v41 = vpop.f32.mrf.mxu1 }
 0x1fa   : > { %v3919_v35 = vadd.f32 %v1358_v59, %v1282_v47 }
 0x1fb   : > { %2545 = vmatmul.msk.bf16.vlgmr.msra.gmra.mxu3 %vm1207_vm5, %v3445_v49 }
 0x1fc   : > { %2566 = vmatmul.msk.bf16.gmra.mxu1 %vm1207_vm5, %v3615_v38 }
 0x1fe   : > { %v1474_v53 = vpop.f32.mrf.mxu3  ;;  %2572 = vmatmul.msk.bf16.vlgmr.msra.gmra.mxu2 %vm1207_vm5, %v3498_v32  ;;  %v1327_v32 = vadd.f32 %v1326_v58, %v3805_v39 }
 0x1ff   : > { %v1514_v36 = vadd.f32 %v1474_v53, %v1322_v28 }
 0x201   : > { %v1639_v7 = vadd.f32 %v1599_v9, %v1514_v36  ;;  %v1673_v11 = vpop.f32.mrf.mxu2  ;;  %v1616_v6 = vpop.f32.mrf.mxu1 }
 0x202   : > { %v1328_v9 = vpop.f32.mrf.mxu0 }
 0x203   : > { %v3928_v45 = vadd.f32 %v1673_v11, %v1639_v7  ;;  %v1329_v42 = vadd.f32 %v1328_v9, %v3823_v16 }
 0x206   : > { %v1476_v31 = vpop.f32.mrf.mxu3 }
 0x207   : > { %v1515_v49 = vadd.f32 %v1476_v31, %v1324_v26 }
 0x209   : > { %v1640_v46 = vadd.f32 %v1601_v54, %v1515_v49  ;;  %v1675_v51 = vpop.f32.mrf.mxu2  ;;  %v1619_v59 = vpop.f32.mrf.mxu1 }
 0x20a   : > { %v1331_v53 = vpop.f32.mrf.mxu0 }
 0x20b   : > { %v3931_v38 = vadd.f32 %v1675_v51, %v1640_v46  ;;  %2546 = vmatmul.msk.bf16.gmra.mxu3 %vm1207_vm5, %v3503_v34 }
 0x20c   : > { %2567 = vmatmul.msk.bf16.gmra.mxu1 %vm1207_vm5, %v3668_v50 }
 0x20e   : > { %v1479_v52 = vpop.f32.mrf.mxu3  ;;  %2573 = vmatmul.msk.bf16.gmra.mxu2 %vm1207_vm5, %v3551_v17  ;;  %v1332_v17 = vadd.f32 %v1331_v53, %v3831_v44 }
 0x20f   : > { %v1516_v23 = vadd.f32 %v1479_v52, %v1327_v32 }
 0x211   : > { %v1641_v0 = vadd.f32 %v1604_v33, %v1516_v23  ;;  %v1678_v54 = vpop.f32.mrf.mxu2  ;;  %v1621_v33 = vpop.f32.mrf.mxu1 }
 0x212   : > { %v1333_v58 = vpop.f32.mrf.mxu0 }
 0x213   : > { %v3940_v47 = vadd.f32 %v1678_v54, %v1641_v0  ;;  %v1334_v31 = vadd.f32 %v1333_v58, %v3845_v63 }
 0x216   : > { %v1481_v34 = vpop.f32.mrf.mxu3 }
 0x217   : > { %v1517_v28 = vadd.f32 %v1481_v34, %v1329_v42 }
 0x219   : > { %v1642_v36 = vadd.f32 %v1606_v56, %v1517_v28  ;;  %v1680_v50 = vpop.f32.mrf.mxu2  ;;  %v1624_v51 = vpop.f32.mrf.mxu1 }
 0x21b   : > { %v3943_v7 = vadd.f32 %v1680_v50, %v1642_v36  ;;  %2547 = vmatmul.msk.bf16.gmra.mxu3 %vm1207_vm5, %v3562_v25 }
 0x21c   : > { %2568 = vmatmul.msk.bf16.gmra.mxu1 %vm1207_vm5, %v3732_v12 }
 0x21e   : > { %v1484_v39 = vpop.f32.mrf.mxu3  ;;  %2574 = vmatmul.msk.bf16.gmra.mxu2 %vm1207_vm5, %v3599_v10 }
 0x21f   : > { %v1518_v16 = vadd.f32 %v1484_v39, %v1332_v17  ;;  %v1732_v39 = vrot.slane %v3863_v18, 1 }
 0x221   : > { %v1643_v11 = vadd.f32 %v1609_v57, %v1518_v16  ;;  %v1683_v56 = vpop.f32.mrf.mxu2 }
 0x223   : > { %v3952_v26 = vadd.f32 %v1683_v56, %v1643_v11 }
 0x226   : > { %v1486_v49 = vpop.f32.mrf.mxu3 }
 0x227   : > { %v1519_v25 = vadd.f32 %v1486_v49, %v1334_v31 }
 0x229   : > { %v1644_v46 = vadd.f32 %v1611_v4, %v1519_v25  ;;  %v1685_v12 = vpop.f32.mrf.mxu2  ;;  %v1626_v4 = vpop.f32.mrf.mxu1 }
 0x22b   : > { %v3955_v32 = vadd.f32 %v1685_v12, %v1644_v46  ;;  %2548 = vmatmul.msk.bf16.gmra.mxu3 %vm1207_vm5, %v3613_v37  ;;  %v1979_v37 = vpack.c.bf16 %v3865_v19, %v3863_v18  ;;  %v1923_v12 = vpop.f32.mrf.mxu0 }
 0x22c   : > { %2569 = vmatmul.msk.bf16.gmra.mxu1 %vm1207_vm5, %v3913_v40 }
 0x22e   : > { %v1489_v10 = vpop.f32.mrf.mxu3  ;;  %2575 = vmatmul.msk.bf16.gmra.mxu2 %vm1207_vm5, %v3654_v13 }
 0x22f   : > { %v1520_v44 = vadd.f32 %v1489_v10, %v3861_v24 }
 0x231   : > { %v1645_v63 = vadd.f32 %v1614_v41, %v1520_v44  ;;  %v1688_v57 = vpop.f32.mrf.mxu2  ;;  %v1629_v13 = vpop.f32.mrf.mxu1 }
 0x233   : > { %v3964_v9 = vadd.f32 %v1688_v57, %v1645_v63  ;;  %v2056_v63 = vsel %vm1362_vm6, %v2053_v2, %v2055_v14 }
 0x234   : > { %v2074_v19 = vsel %vm3766_vm1, %v2056_v63, 0.0 }
 0x236   : > { %v1491_v52 = vpop.f32.mrf.mxu3 }
 0x237   : > { %v1521_v23 = vadd.f32 %v1491_v52, %v3871_v62  ;;  %v2054_v52 = vsel %vm1362_vm6, %v1732_v39, %v2053_v2  ;;  %v2737_v2 = vld [vmem:[%s3295_s26] sm:$0xff] }
 0x239   : > { %v1646_v0 = vadd.f32 %v1616_v6, %v1521_v23  ;;  %v1690_v54 = vpop.f32.mrf.mxu2  ;;  %v1631_v53 = vpop.f32.mrf.mxu1 }
 0x23b   : > { %v3969_v40 = vadd.f32 %v1690_v54, %v1646_v0  ;;  %2549 = vmatmul.msk.bf16.gmra.mxu3 %vm1207_vm5, %v3656_v43  ;;  %v1925_v0 = vpop.f32.mrf.mxu0 }
 0x23c   : > { %2570 = vmatmul.msk.bf16.gmra.mxu1 %vm1207_vm5, %v1979_v37  ;;  %v2082_v37 = vpack.c.bf16 %v2074_v19, %v2054_v52  ;;  %v2738_v19 = vld [vmem:[%s3295_s26 + $0x8] sm:$0xff] }
 0x23e   : > { %v1494_v24 = vpop.f32.mrf.mxu3  ;;  %2576 = vmatmul.msk.bf16.gmra.mxu2 %vm1207_vm5, %v3711_v61 }
 0x23f   : > { %v1522_v41 = vadd.f32 %v1494_v24, %v3883_v30 }
 0x241   : > { %v1647_v62 = vadd.f32 %v1619_v59, %v1522_v41  ;;  %v1693_v42 = vpop.f32.mrf.mxu2  ;;  %v1730_v59 = vrot.slane %v3821_v21, 1 }
 0x243   : > { %v3977_v34 = vadd.f32 %v1693_v42, %v1647_v62  ;;  %v1733_v58 = vsel %vm1362_vm6, %v1730_v59, %v1732_v39 }
 0x246   : > { %v1496_v6 = vpop.f32.mrf.mxu3 }
 0x247   : > { %v1523_v28 = vadd.f32 %v1496_v6, %v3885_v55  ;;  %v1634_v55 = vpop.f32.mrf.mxu1  ;;  %v1928_v6 = vpop.f32.mrf.mxu0 }
 0x249   : > { %v1648_v36 = vadd.f32 %v1621_v33, %v1523_v28  ;;  %v1695_v50 = vpop.f32.mrf.mxu2 }
 0x24b   : > { %v3980_v43 = vadd.f32 %v1695_v50, %v1648_v36  ;;  %2550 = vmatmul.msk.bf16.gmra.mxu3 %vm1207_vm5, %v3720_v60 }
 0x24e   : > { %v1499_v17 = vpop.f32.mrf.mxu3  ;;  %2577 = vmatmul.msk.bf16.gmra.mxu2 %vm1207_vm5, %v3781_v1  ;;  %v1731_v1 = vsel %vm1362_vm6, %v1394_v3, %v1730_v59 }
 0x24f   : > { %v1524_v61 = vadd.f32 %v1499_v17, %v3893_v29  ;;  %v2072_v29 = vsel %vm3696_vm12, %v1733_v58, 0.0  ;;  %v1636_v18 = vpop.f32.mrf.mxu1  ;;  %v1930_v59 = vpop.f32.mrf.mxu0 }
 0x250   : > { %v2081_v49 = vpack.c.bf16 %v2072_v29, %v1731_v1 }
 0x251   : > { %v1649_v30 = vadd.f32 %v1624_v51, %v1524_v61  ;;  %v1698_v16 = vpop.f32.mrf.mxu2 }
 0x253   : > { %v3989_v33 = vadd.f32 %v1698_v16, %v1649_v30 }
 0x256   : > { %v1501_v11 = vpop.f32.mrf.mxu3 }
 0x257   : > { %v1525_v60 = vadd.f32 %v1501_v11, %v3895_v48  ;;  %v1997_v10 = vpop.f32.mrf.mxu1  ;;  %v4034_v11 = vld [vmem:[%s4310_s5] ss:$0 sm:$0xff] }
 0x259   : > { %v1650_v56 = vadd.f32 %v1626_v4, %v1525_v60  ;;  %v1700_v21 = vpop.f32.mrf.mxu2 }
 0x25b   : > { %v3998_v31 = vadd.f32 %v1700_v21, %v1650_v56  ;;  %2551 = vmatmul.msk.bf16.gmra.mxu3 %vm1207_vm5, %v3783_v27  ;;  %v1751_v27 = vsel %vm3766_vm1, %v1733_v58, 0.0 }
 0x25e   : > { %v1504_v25 = vpop.f32.mrf.mxu3  ;;  %2578 = vmatmul.msk.bf16.gmra.mxu2 %vm1207_vm5, %v2081_v49  ;;  %v1933_v49 = vpop.f32.mrf.mxu0 }
 0x25f   : > { %v1526_v48 = vadd.f32 %v1504_v25, %v3903_v15  ;;  %v1759_v15 = vpack.c.bf16 %v1751_v27, %v1731_v1 }
 0x261   : > { %v1651_v46 = vadd.f32 %v1629_v13, %v1526_v48  ;;  %v1703_v3 = vpop.f32.mrf.mxu2 }
 0x263   : > { %v4006_v51 = vadd.f32 %v1703_v3, %v1651_v46 }
 0x266   : > { %v1506_v44 = vpop.f32.mrf.mxu3  ;;  %v1935_v52 = vpop.f32.mrf.mxu0 }
 0x267   : > { %v1527_v57 = vadd.f32 %v1506_v44, %v3905_v22  ;;  %v1999_v22 = vpop.f32.mrf.mxu1 }
 0x269   : > { %v1652_v4 = vadd.f32 %v1631_v53, %v1527_v57  ;;  %v1705_v5 = vpop.f32.mrf.mxu2 }
 0x26b   : > { %v4015_v23 = vadd.f32 %v1705_v5, %v1652_v4  ;;  %2552 = vmatmul.msk.bf16.gmra.mxu3 %vm1207_vm5, %v1759_v15 }
 0x26e   : > { %v1509_v54 = vpop.f32.mrf.mxu3  ;;  %2579 = vmatmul.msk.bf16.gmra.mxu2 %vm1207_vm5, %v2082_v37 }
 0x26f   : > { %v1528_v13 = vadd.f32 %v1509_v54, %v3917_v20  ;;  %v2002_v53 = vpop.f32.mrf.mxu1 }
 0x271   : > { %v1653_v24 = vadd.f32 %v1634_v55, %v1528_v13  ;;  %v1708_v41 = vpop.f32.mrf.mxu2  ;;  %v4029_v55 = vld [vmem:[%s4309_s14] ss:$0 sm:$0xff] }
 0x273   : > { %v4020_v62 = vadd.f32 %v1708_v41, %v1653_v24 }
 0x276   : > { %v1511_v42 = vpop.f32.mrf.mxu3 }
 0x277   : > { %v1529_v8 = vadd.f32 %v1511_v42, %v3919_v35  ;;  %v2004_v16 = vpop.f32.mrf.mxu1 }
 0x279   : > { %v1654_v28 = vadd.f32 %v1636_v18, %v1529_v8  ;;  %v1710_v36 = vpop.f32.mrf.mxu2 }
 0x27b   : > { %v4023_v50 = vadd.f32 %v1710_v36, %v1654_v28  ;;  %v2739_v28 = vld [vmem:[%s3295_s26 + $0x10] sm:$0xff] }
 0x27e   : > { %v1798_v17 = vpop.f32.mrf.mxu3 }
 0x27f   : > { %v1838_v61 = vadd.f32 %v1798_v17, %v3928_v45  ;;  %v2007_v46 = vpop.f32.mrf.mxu1 }
 0x281   : > { %v1963_v30 = vadd.f32 %v1923_v12, %v1838_v61  ;;  %v2121_v20 = vpop.f32.mrf.mxu2  ;;  %v1938_v61 = vpop.f32.mrf.mxu0 }
 0x283   : > { %v2037_v39 = vadd.f32 %v1997_v10, %v1963_v30 }
 0x285   : > { %v2161_v35 = vadd.f32 %v2121_v20, %v2037_v39 }
 0x286   : > { %v1800_v58 = vpop.f32.mrf.mxu3 }
 0x287   : > { %v2181_v45 = vmul.f32 %v4029_v55, %v2161_v35  ;;  %v1839_v60 = vadd.f32 %v1800_v58, %v3931_v38  ;;  %v2009_v54 = vpop.f32.mrf.mxu1 }
 0x289   : > { %v2201_v56 = vadd.f32 %v4034_v11, %v2181_v45  ;;  %v1964_v1 = vadd.f32 %v1925_v0, %v1839_v60  ;;  %v2123_v29 = vpop.f32.mrf.mxu2  ;;  %v2740_v60 = vld [vmem:[%s3295_s26 + $0x18] sm:$0xff] }
 0x28b   : > { %vm2217_vm5 = vcmp.gt.f32.partialorder %v2201_v56, 0.0  ;;  %v2233_v21 = vmul.f32 0.1, %v2201_v56  ;;  %v2038_v18 = vadd.f32 %v1999_v22, %v1964_v1 }
 0x28d   : > { %v2249_v25 = vsel %vm2217_vm5, %v2201_v56, %v2233_v21  ;;  %v2162_v48 = vadd.f32 %v2123_v29, %v2038_v18 }
 0x28e   : > { %v2265_v3 = vadd.f32 %v2737_v2, %v2249_v25  ;;  %v1803_v14 = vpop.f32.mrf.mxu3 }
 0x28f   : > { %v2182_v12 = vmul.f32 %v4029_v55, %v2162_v48  ;;  %v1840_v38 = vadd.f32 %v1803_v14, %v3940_v47  ;;  %v2012_v20 = vpop.f32.mrf.mxu1 }
 0x290   : > { %2281 = vst.msk [vmem:[%s4044_s23] sm:$0xff] %vm534_vm0, %v2265_v3 }
 0x291   : > { %v2202_v10 = vadd.f32 %v4034_v11, %v2182_v12  ;;  %v1965_v44 = vadd.f32 %v1928_v6, %v1840_v38  ;;  %v2126_v27 = vpop.f32.mrf.mxu2  ;;  %v2741_v12 = vld [vmem:[%s3295_s26 + $0x20] sm:$0xff] }
 0x293   : > { %vm2218_vm6 = vcmp.gt.f32.partialorder %v2202_v10, 0.0  ;;  %v2234_v63 = vmul.f32 0.1, %v2202_v10  ;;  %v2039_v57 = vadd.f32 %v2002_v53, %v1965_v44 }
 0x295   : > { %v2250_v4 = vsel %vm2218_vm6, %v2202_v10, %v2234_v63  ;;  %v2163_v15 = vadd.f32 %v2126_v27, %v2039_v57 }
 0x296   : > { %v2266_v47 = vadd.f32 %v2738_v19, %v2250_v4  ;;  %v1805_v5 = vpop.f32.mrf.mxu3 }
 0x297   : > { %v2183_v37 = vmul.f32 %v4029_v55, %v2163_v15  ;;  %v1841_v0 = vadd.f32 %v1805_v5, %v3943_v7  ;;  %v2014_v2 = vpop.f32.mrf.mxu1 }
 0x298   : > { %2282 = vst.msk [vmem:[%s4044_s23 + $0x8] sm:$0xff] %vm534_vm0, %v2266_v47 }
 0x299   : > { %v2203_v13 = vadd.f32 %v4034_v11, %v2183_v37  ;;  %v1966_v22 = vadd.f32 %v1930_v59, %v1841_v0  ;;  %v2128_v24 = vpop.f32.mrf.mxu2  ;;  %v2742_v37 = vld [vmem:[%s3295_s26 + $0x28] sm:$0xff] }
 0x29b   : > { %vm2219_vm9 = vcmp.gt.f32.partialorder %v2203_v13, 0.0  ;;  %v2235_v41 = vmul.f32 0.1, %v2203_v13  ;;  %v2040_v42 = vadd.f32 %v2004_v16, %v1966_v22 }
 0x29d   : > { %v2251_v8 = vsel %vm2219_vm9, %v2203_v13, %v2235_v41  ;;  %v2164_v6 = vadd.f32 %v2128_v24, %v2040_v42 }
 0x29e   : > { %v2267_v53 = vadd.f32 %v2739_v28, %v2251_v8  ;;  %v1808_v36 = vpop.f32.mrf.mxu3 }
 0x29f   : > { %v2184_v17 = vmul.f32 %v4029_v55, %v2164_v6  ;;  %v1842_v7 = vadd.f32 %v1808_v36, %v3952_v26  ;;  %v2017_v5 = vpop.f32.mrf.mxu1  ;;  %v2743_v36 = vld [vmem:[%s3295_s26 + $0x30] sm:$0xff] }
 0x2a0   : > { %2283 = vst.msk [vmem:[%s4044_s23 + $0x10] sm:$0xff] %vm534_vm0, %v2267_v53 }
 0x2a1   : > { %v2204_v30 = vadd.f32 %v4034_v11, %v2184_v17  ;;  %v1967_v59 = vadd.f32 %v1933_v49, %v1842_v7  ;;  %v2131_v39 = vpop.f32.mrf.mxu2  ;;  %v1940_v49 = vpop.f32.mrf.mxu0 }
 0x2a3   : > { %vm2220_vm3 = vcmp.gt.f32.partialorder %v2204_v30, 0.0  ;;  %v2236_v16 = vmul.f32 0.1, %v2204_v30  ;;  %v2041_v35 = vadd.f32 %v2007_v46, %v1967_v59 }
 0x2a5   : > { %v2252_v58 = vsel %vm2220_vm3, %v2204_v30, %v2236_v16  ;;  %v2165_v45 = vadd.f32 %v2131_v39, %v2041_v35 }
 0x2a6   : > { %v2268_v56 = vadd.f32 %v2740_v60, %v2252_v58  ;;  %v1810_v1 = vpop.f32.mrf.mxu3  ;;  %v2744_v60 = vld [vmem:[%s3295_s26 + $0x38] sm:$0xff] }
 0x2a7   : > { %v2185_v26 = vmul.f32 %v4029_v55, %v2165_v45  ;;  %v1843_v29 = vadd.f32 %v1810_v1, %v3955_v32  ;;  %v2019_v30 = vpop.f32.mrf.mxu1 }
 0x2a8   : > { %2284 = vst.msk [vmem:[%s4044_s23 + $0x18] sm:$0xff] %vm534_vm0, %v2268_v56 }
 0x2a9   : > { %v2205_v21 = vadd.f32 %v4034_v11, %v2185_v26  ;;  %v1968_v18 = vadd.f32 %v1935_v52, %v1843_v29  ;;  %v2133_v25 = vpop.f32.mrf.mxu2  ;;  %v1943_v52 = vpop.f32.mrf.mxu0 }
 0x2ab   : > { %vm2221_vm8 = vcmp.gt.f32.partialorder %v2205_v21, 0.0  ;;  %v2237_v48 = vmul.f32 0.1, %v2205_v21  ;;  %v2042_v46 = vadd.f32 %v2009_v54, %v1968_v18 }
 0x2ad   : > { %v2253_v3 = vsel %vm2221_vm8, %v2205_v21, %v2237_v48  ;;  %v2166_v14 = vadd.f32 %v2133_v25, %v2042_v46 }
 0x2ae   : > { %v2269_v38 = vadd.f32 %v2741_v12, %v2253_v3  ;;  %v1813_v10 = vpop.f32.mrf.mxu3 }
 0x2af   : > { %v2186_v32 = vmul.f32 %v4029_v55, %v2166_v14  ;;  %v1844_v44 = vadd.f32 %v1813_v10, %v3964_v9  ;;  %v2745_v14 = vld [vmem:[%s3295_s26 + $0x40] sm:$0xff] }
 0x2b0   : > { %2285 = vst.msk [vmem:[%s4044_s23 + $0x20] sm:$0xff] %vm534_vm0, %v2269_v38 }
 0x2b1   : > { %v2206_v27 = vadd.f32 %v4034_v11, %v2186_v32  ;;  %v1969_v63 = vadd.f32 %v1938_v61, %v1844_v44  ;;  %v2136_v57 = vpop.f32.mrf.mxu2  ;;  %v1945_v53 = vpop.f32.mrf.mxu0 }
 0x2b3   : > { %vm2222_vm14 = vcmp.gt.f32.partialorder %v2206_v27, 0.0  ;;  %v2238_v4 = vmul.f32 0.1, %v2206_v27  ;;  %v2043_v15 = vadd.f32 %v2012_v20, %v1969_v63 }
 0x2b5   : > { %v2254_v19 = vsel %vm2222_vm14, %v2206_v27, %v2238_v4  ;;  %v2167_v47 = vadd.f32 %v2136_v57, %v2043_v15 }
 0x2b6   : > { %v2270_v0 = vadd.f32 %v2742_v37, %v2254_v19  ;;  %v1815_v54 = vpop.f32.mrf.mxu3 }
 0x2b7   : > { %v2187_v9 = vmul.f32 %v4029_v55, %v2167_v47  ;;  %v1845_v13 = vadd.f32 %v1815_v54, %v3969_v40  ;;  %v2746_v47 = vld [vmem:[%s3295_s26 + $0x48] sm:$0xff] }
 0x2b8   : > { %2286 = vst.msk [vmem:[%s4044_s23 + $0x28] sm:$0xff] %vm534_vm0, %v2270_v0 }
 0x2b9   : > { %v2207_v22 = vadd.f32 %v4034_v11, %v2187_v9  ;;  %v1970_v24 = vadd.f32 %v1940_v49, %v1845_v13  ;;  %v2138_v41 = vpop.f32.mrf.mxu2  ;;  %v1948_v29 = vpop.f32.mrf.mxu0 }
 0x2ba   : > { %v2022_v49 = vpop.f32.mrf.mxu1 }
 0x2bb   : > { %vm2223_vm12 = vcmp.gt.f32.partialorder %v2207_v22, 0.0  ;;  %v2239_v42 = vmul.f32 0.1, %v2207_v22  ;;  %v2044_v8 = vadd.f32 %v2014_v2, %v1970_v24 }
 0x2bd   : > { %v2255_v6 = vsel %vm2223_vm12, %v2207_v22, %v2239_v42  ;;  %v2168_v28 = vadd.f32 %v2138_v41, %v2044_v8 }
 0x2be   : > { %v2271_v17 = vadd.f32 %v2743_v36, %v2255_v6  ;;  %v1818_v7 = vpop.f32.mrf.mxu3 }
 0x2bf   : > { %v2188_v61 = vmul.f32 %v4029_v55, %v2168_v28  ;;  %v1846_v40 = vadd.f32 %v1818_v7, %v3977_v34  ;;  %v2747_v28 = vld [vmem:[%s3295_s26 + $0x50] sm:$0xff] }
 0x2c0   : > { %2287 = vst.msk [vmem:[%s4044_s23 + $0x30] sm:$0xff] %vm534_vm0, %v2271_v17 }
 0x2c1   : > { %v2208_v59 = vadd.f32 %v4034_v11, %v2188_v61  ;;  %v1971_v20 = vadd.f32 %v1943_v52, %v1846_v40  ;;  %v2141_v39 = vpop.f32.mrf.mxu2  ;;  %v1950_v27 = vpop.f32.mrf.mxu0 }
 0x2c2   : > { %v2024_v15 = vpop.f32.mrf.mxu1 }
 0x2c3   : > { %vm2224_vm11 = vcmp.gt.f32.partialorder %v2208_v59, 0.0  ;;  %v2240_v16 = vmul.f32 0.1, %v2208_v59  ;;  %v2045_v35 = vadd.f32 %v2017_v5, %v1971_v20 }
 0x2c5   : > { %v2256_v58 = vsel %vm2224_vm11, %v2208_v59, %v2240_v16  ;;  %v2169_v45 = vadd.f32 %v2141_v39, %v2045_v35  ;;  %v2748_v35 = vld [vmem:[%s3295_s26 + $0x58] sm:$0xff] }
 0x2c6   : > { %v2272_v56 = vadd.f32 %v2744_v60, %v2256_v58  ;;  %v1820_v1 = vpop.f32.mrf.mxu3 }
 0x2c7   : > { %v2189_v26 = vmul.f32 %v4029_v55, %v2169_v45  ;;  %v1847_v34 = vadd.f32 %v1820_v1, %v3980_v43 }
 0x2c8   : > { %2288 = vst.msk [vmem:[%s4044_s23 + $0x38] sm:$0xff] %vm534_vm0, %v2272_v56 }
 0x2c9   : > { %v2209_v21 = vadd.f32 %v4034_v11, %v2189_v26  ;;  %v1972_v18 = vadd.f32 %v1945_v53, %v1847_v34  ;;  %v2143_v25 = vpop.f32.mrf.mxu2  ;;  %v1953_v41 = vpop.f32.mrf.mxu0 }
 0x2ca   : > { %v2027_v6 = vpop.f32.mrf.mxu1 }
 0x2cb   : > { %vm2225_vm13 = vcmp.gt.f32.partialorder %v2209_v21, 0.0  ;;  %v2241_v48 = vmul.f32 0.1, %v2209_v21  ;;  %v2046_v46 = vadd.f32 %v2019_v30, %v1972_v18 }
 0x2cd   : > { %v2257_v2 = vsel %vm2225_vm13, %v2209_v21, %v2241_v48  ;;  %v2170_v3 = vadd.f32 %v2143_v25, %v2046_v46  ;;  %v2749_v48 = vld [vmem:[%s3295_s26 + $0x60] sm:$0xff] }
 0x2ce   : > { %v2273_v12 = vadd.f32 %v2745_v14, %v2257_v2  ;;  %v1823_v38 = vpop.f32.mrf.mxu3 }
 0x2cf   : > { %v2190_v43 = vmul.f32 %v4029_v55, %v2170_v3  ;;  %v1848_v10 = vadd.f32 %v1823_v38, %v3989_v33 }
 0x2d0   : > { %2289 = vst.msk [vmem:[%s4044_s23 + $0x40] sm:$0xff] %vm534_vm0, %v2273_v12 }
 0x2d1   : > { %v2210_v32 = vadd.f32 %v4034_v11, %v2190_v43  ;;  %v1973_v44 = vadd.f32 %v1948_v29, %v1848_v10  ;;  %v2146_v63 = vpop.f32.mrf.mxu2  ;;  %v1955_v16 = vpop.f32.mrf.mxu0 }
 0x2d2   : > { %v2029_v56 = vpop.f32.mrf.mxu1 }
 0x2d3   : > { %vm2226_vm4 = vcmp.gt.f32.partialorder %v2210_v32, 0.0  ;;  %v2242_v57 = vmul.f32 0.1, %v2210_v32  ;;  %v2047_v4 = vadd.f32 %v2022_v49, %v1973_v44 }
 0x2d5   : > { %v2258_v52 = vsel %vm2226_vm4, %v2210_v32, %v2242_v57  ;;  %v2171_v19 = vadd.f32 %v2146_v63, %v2047_v4  ;;  %v2750_v63 = vld [vmem:[%s3295_s26 + $0x68] sm:$0xff] }
 0x2d6   : > { %v2274_v5 = vadd.f32 %v2746_v47, %v2258_v52  ;;  %v1825_v37 = vpop.f32.mrf.mxu3 }
 0x2d7   : > { %v2191_v33 = vmul.f32 %v4029_v55, %v2171_v19  ;;  %v1849_v0 = vadd.f32 %v1825_v37, %v3998_v31 }
 0x2d8   : > { %2290 = vst.msk [vmem:[%s4044_s23 + $0x48] sm:$0xff] %vm534_vm0, %v2274_v5 }
 0x2d9   : > { %v2211_v54 = vadd.f32 %v4034_v11, %v2191_v33  ;;  %v1974_v9 = vadd.f32 %v1950_v27, %v1849_v0  ;;  %v2148_v13 = vpop.f32.mrf.mxu2  ;;  %v1958_v25 = vpop.f32.mrf.mxu0 }
 0x2da   : > { %v2032_v14 = vpop.f32.mrf.mxu1 }
 0x2db   : > { %vm2227_vm1 = vcmp.gt.f32.partialorder %v2211_v54, 0.0  ;;  %v2243_v22 = vmul.f32 0.1, %v2211_v54  ;;  %v2048_v24 = vadd.f32 %v2024_v15, %v1974_v9 }
 0x2dd   : > { %v2259_v42 = vsel %vm2227_vm1, %v2211_v54, %v2243_v22  ;;  %v2172_v8 = vadd.f32 %v2148_v13, %v2048_v24 }
 0x2de   : > { %v2275_v53 = vadd.f32 %v2747_v28, %v2259_v42  ;;  %v1828_v36 = vpop.f32.mrf.mxu3 }
 0x2df   : > { %v2192_v31 = vmul.f32 %v4029_v55, %v2172_v8  ;;  %v1850_v17 = vadd.f32 %v1828_v36, %v4006_v51  ;;  %v2752_v8 = vld [vmem:[%s3295_s26 + $0x78] sm:$0xff] }
 0x2e0   : > { %2291 = vst.msk [vmem:[%s4044_s23 + $0x50] sm:$0xff] %vm534_vm0, %v2275_v53 }
 0x2e1   : > { %v2212_v7 = vadd.f32 %v4034_v11, %v2192_v31  ;;  %v1975_v61 = vadd.f32 %v1953_v41, %v1850_v17  ;;  %v2151_v40 = vpop.f32.mrf.mxu2  ;;  %v1960_v52 = vpop.f32.mrf.mxu0 }
 0x2e2   : > { %v2034_v5 = vpop.f32.mrf.mxu1 }
 0x2e3   : > { %vm2228_vm10 = vcmp.gt.f32.partialorder %v2212_v7, 0.0  ;;  %v2244_v30 = vmul.f32 0.1, %v2212_v7  ;;  %v2049_v59 = vadd.f32 %v2027_v6, %v1975_v61 }
 0x2e5   : > { %v2260_v20 = vsel %vm2228_vm10, %v2212_v7, %v2244_v30  ;;  %v2173_v39 = vadd.f32 %v2151_v40, %v2049_v59 }
 0x2e6   : > { %v2276_v58 = vadd.f32 %v2748_v35, %v2260_v20  ;;  %v1830_v45 = vpop.f32.mrf.mxu3 }
 0x2e7   : > { %v2193_v60 = vmul.f32 %v4029_v55, %v2173_v39  ;;  %v1851_v51 = vadd.f32 %v1830_v45, %v4015_v23 }
 0x2e8   : > { %2292 = vst.msk [vmem:[%s4044_s23 + $0x58] sm:$0xff] %vm534_vm0, %v2276_v58 }
 0x2e9   : > { %v2213_v1 = vadd.f32 %v4034_v11, %v2193_v60  ;;  %v1976_v26 = vadd.f32 %v1955_v16, %v1851_v51  ;;  %v2153_v34 = vpop.f32.mrf.mxu2 }
 0x2eb   : > { %vm2229_vm2 = vcmp.gt.f32.partialorder %v2213_v1, 0.0  ;;  %v2245_v29 = vmul.f32 0.1, %v2213_v1  ;;  %v2050_v21 = vadd.f32 %v2029_v56, %v1976_v26 }
 0x2ed   : > { %v2261_v18 = vsel %vm2229_vm2, %v2213_v1, %v2245_v29  ;;  %v2174_v49 = vadd.f32 %v2153_v34, %v2050_v21 }
 0x2ee   : > { %v2277_v46 = vadd.f32 %v2749_v48, %v2261_v18  ;;  %v1833_v2 = vpop.f32.mrf.mxu3 }
 0x2ef   : > { %v2194_v23 = vmul.f32 %v4029_v55, %v2174_v49  ;;  %v1852_v3 = vadd.f32 %v1833_v2, %v4020_v62 }
 0x2f0   : > { %2293 = vst.msk [vmem:[%s4044_s23 + $0x60] sm:$0xff] %vm534_vm0, %v2277_v46 }
 0x2f1   : > { %v2214_v12 = vadd.f32 %v4034_v11, %v2194_v23  ;;  %v1977_v38 = vadd.f32 %v1958_v25, %v1852_v3  ;;  %v2156_v43 = vpop.f32.mrf.mxu2 }
 0x2f3   : > { %vm2230_vm7 = vcmp.gt.f32.partialorder %v2214_v12, 0.0  ;;  %v2246_v10 = vmul.f32 0.1, %v2214_v12  ;;  %v2051_v32 = vadd.f32 %v2032_v14, %v1977_v38 }
 0x2f5   : > { %v2262_v44 = vsel %vm2230_vm7, %v2214_v12, %v2246_v10  ;;  %v2175_v27 = vadd.f32 %v2156_v43, %v2051_v32 }
 0x2f6   : > { %v2278_v57 = vadd.f32 %v2750_v63, %v2262_v44  ;;  %v1835_v4 = vpop.f32.mrf.mxu3 }
 0x2f7   : > { %v2195_v62 = vmul.f32 %v4029_v55, %v2175_v27  ;;  %v1853_v15 = vadd.f32 %v1835_v4, %v4023_v50  ;;  %v2751_v50 = vld [vmem:[%s3295_s26 + $0x70] sm:$0xff] }
 0x2f8   : > { %2294 = vst.msk [vmem:[%s4044_s23 + $0x68] sm:$0xff] %vm534_vm0, %v2278_v57 }
 0x2f9   : > { %v2215_v19 = vadd.f32 %v4034_v11, %v2195_v62  ;;  %v1978_v47 = vadd.f32 %v1960_v52, %v1853_v15  ;;  %v2158_v0 = vpop.f32.mrf.mxu2 }
 0x2fb   : > { %vm2231_vm15 = vcmp.gt.f32.partialorder %v2215_v19, 0.0  ;;  %v2247_v37 = vmul.f32 0.1, %v2215_v19  ;;  %v2052_v33 = vadd.f32 %v2034_v5, %v1978_v47 }
 0x2fd   : > { %v2263_v54 = vsel %vm2231_vm15, %v2215_v19, %v2247_v37  ;;  %v2176_v9 = vadd.f32 %v2158_v0, %v2052_v33 }
 0x2fe   : > { %v2279_v13 = vadd.f32 %v2751_v50, %v2263_v54 }
 0x2ff   : > { %v2196_v22 = vmul.f32 %v4029_v55, %v2176_v9 }
 0x300   : > { %2295 = vst.msk [vmem:[%s4044_s23 + $0x70] sm:$0xff] %vm534_vm0, %v2279_v13 }
 0x301   : > { %v2216_v24 = vadd.f32 %v4034_v11, %v2196_v22 }
 0x303   : > { %vm2232_vm5 = vcmp.gt.f32.partialorder %v2216_v24, 0.0  ;;  %v2248_v41 = vmul.f32 0.1, %v2216_v24 }
 0x305   : > { %v2264_v42 = vsel %vm2232_vm5, %v2216_v24, %v2248_v41 }
 0x306   : > { %v2280_v6 = vadd.f32 %v2752_v8, %v2264_v42 }
 0x308   : > { %2296 = vst.msk [vmem:[%s4044_s23 + $0x78] sm:$0xff] %vm534_vm0, %v2280_v6 }
 0x309   : > { %2870 = shalt.err (!%p2867_p12)
}
 0x30a   : > { %s3002_s25 = smov 128   ;;  %s3003_s26 = smov 8  }
 0x30b   : > { %2598 = dma.vmem_to_hbm [thread:$0]  (%p3225_p4), %s2314_s1, 2048, %s2316_s0, %s2298_s15, %s3002_s25, %s3002_s25, %s3003_s26  }
 0x30c PF: > { %s4313_s23 = sld [smem:[#allocation14_spill]]  ;;  %p2615_p13 = scmp.ge.s32.totalorder %s2997_s22, 2 }
 0x30e   : > { %p2611_p1 = pnand %p2615_p13, %p3229_p6 }
 0x310   : > { %p2612_p2 = pneg %p2611_p1 }
 0x312   : > { %s2330_s27 = sand.u32 1, %s4313_s23  }
 0x313   : > { %s2331_s30 = scalar_lea.sflag [#allocation4], %s2330_s27 }
 0x314   : > { %2940 = dma.done.wait (%p2612_p2), %s2331_s30, 2048  }
 0x315   : > { %2942 = vsyncadd (%p2612_p2), %s2331_s30, 4294965248  ;;  %s28_s22 = sadd.s32 1, %s2997_s22   ;;  %s4316_s8 = sld [smem:[#allocation13_spill]] }
 0x316   : > { %p4157_p11 = scmp.ge.s32.totalorder %s28_s22, 6   ;;  %s4317_s14 = sld [smem:[#allocation23_spill]] }
 0x317   : > { %s4318_s28 = sld [smem:[#allocation15_spill]]  ;;  %s4325_s30 = smov %s2949_s10 }
 0x318   : > { %s4319_s9 = sld [smem:[#allocation24_spill]]  ;;  %s4326_s10 = smov %s2953_s11 }
 0x319   : > { %s4320_s18 = sld [smem:[#allocation18_spill]]  ;;  %s4327_s11 = smov %s3272_s29 }
 0x31a   : > { %s4321_s19 = sld [smem:[#allocation19_spill]]  ;;  %s4328_s12 = smov %s2961_s13 }
 0x31b   : > { %s4322_s20 = sld [smem:[#allocation20_spill]]  ;;  %s4329_s13 = smov %s4316_s8 }
 0x31c   : > { %s4323_s21 = sld [smem:[#allocation21_spill]]  ;;  %s4330_s15 = smov %s2973_s16 }
 0x31d   : > { %s4331_s16 = smov %s4318_s28  ;;  %27 = sbr.rel (!%p4157_p11) target bundleno = 22 (0x16), region = 133 }
 0x31e   : > { %s4332_s17 = smov %s4319_s9 }
 0x322   :  { %2337 = vsyncpa [#allocation3], 1 }
 0x323   :  { %2339 = vsyncpa [#allocation3 + $0x1], 1 }
 0x324   :  { %2340 = vsyncpa [#allocation6], 1 }
 0x325   :  { %2342 = vsyncpa [#allocation6 + $0x1], 1 }
 0x326   :  { %2343 = vsyncpa [#allocation4], 1 }
 0x327   :  { %2345 = vsyncpa [#allocation4 + $0x1], 1 }

</bundles_post_ra>
